<compile_context>
chip_gen: v7x
topology: tpu7x:2x2x1
jax: 0.10.0
libtpu: 0.0.40
codegen_flags: <defaults>
</compile_context>

<pallas_src>
import jax
import jax.numpy as jnp
from jax.experimental import pallas as pl
from jax.experimental.pallas import tpu as pltpu


# ----------------------------------------------------------------------------
# small helpers
# ----------------------------------------------------------------------------
def _round_up(x, m):
    return (x + m - 1) // m * m


def _cdiv(a, b):
    return (a + b - 1) // b


def _tpu_generation():
    try:
        kind = jax.devices()[0].device_kind.lower()
    except Exception:
        return "unknown"
    if "v5 lite" in kind or "v5e" in kind or "v5litepod" in kind:
        return "v5e"
    if "v6" in kind:
        return "v6e"
    if "v7" in kind or "7x" in kind:
        return "v7x"
    return "unknown"


def _vmem_capacity_bytes(gen):
    try:
        return int(pltpu.get_tpu_info().vmem_capacity_bytes)
    except Exception:
        # v7x: 64 MiB per TensorCore; v5e/v6e: 128 MiB.
        return (64 << 20) if gen == "v7x" else (128 << 20)


# ----------------------------------------------------------------------------
# one-time parameter preparation (hoisted out of the forward)
# ----------------------------------------------------------------------------
def prepare_params(params):
    """Pad every feature dim to a multiple of 128 (lane-dense) and cast the
    weights to bf16 for the MXU.  Do this ONCE and reuse across forward calls:
    per-call HBM traffic is then just x/out plus one bf16 weight read."""
    w1, b1, w2, b2, w3, b3, w4, b4 = params
    D, Hd = w1.shape
    Z = w2.shape[1]
    Dp, Hp, Zp = _round_up(D, 128), _round_up(Hd, 128), _round_up(Z, 128)

    def pad2(a, r, c, dt):
        return jnp.pad(a, ((0, r - a.shape[0]), (0, c - a.shape[1]))).astype(dt)

    prepped = {
        "w1": pad2(w1, Dp, Hp, jnp.bfloat16),
        "b1": pad2(b1, 1, Hp, jnp.float32),
        "w2": pad2(w2, Hp, Zp, jnp.bfloat16),
        "b2": pad2(b2, 1, Zp, jnp.float32),
        "w3": pad2(w3, Zp, Hp, jnp.bfloat16),
        "b3": pad2(b3, 1, Hp, jnp.float32),
        "w4": pad2(w4, Hp, Dp, jnp.bfloat16),
        "b4": pad2(b4, 1, Dp, jnp.float32),
        "dims": (D, Hd, Z, Dp, Hp, Zp),
    }
    for k in ("w1", "b1", "w2", "b2", "w3", "b3", "w4", "b4"):
        prepped[k] = jax.block_until_ready(prepped[k])
    return prepped


# ----------------------------------------------------------------------------
# kernels
# ----------------------------------------------------------------------------
def _ae_kernel_resident(x_ref, w1_ref, b1_ref, w2_ref, b2_ref,
                        w3_ref, b3_ref, w4_ref, b4_ref, out_ref):
    """Fused encoder+decoder on one (TB, Dp) batch tile; all weights
    VMEM-resident.  MXU operands bf16, f32 accumulation; bias/ReLU in f32."""
    x = x_ref[...].astype(jnp.bfloat16)

    # ---- encoder ----
    h = jnp.dot(x, w1_ref[...], preferred_element_type=jnp.float32) + b1_ref[...]
    h = jnp.maximum(h, 0.0)
    z = jnp.dot(h.astype(jnp.bfloat16), w2_ref[...],
                preferred_element_type=jnp.float32) + b2_ref[...]

    # ---- decoder ----
    g = jnp.dot(z.astype(jnp.bfloat16), w3_ref[...],
                preferred_element_type=jnp.float32) + b3_ref[...]
    g = jnp.maximum(g, 0.0)
    y = jnp.dot(g.astype(jnp.bfloat16), w4_ref[...],
                preferred_element_type=jnp.float32) + b4_ref[...]

    out_ref[...] = y.astype(out_ref.dtype)


def _ae_kernel_d_tiled(x_ref, w1_ref, b1_ref, w2_ref, b2_ref,
                       w3_ref, b3_ref, w4_ref, b4_ref, out_ref,
                       hacc_ref, g_ref):
    """K-tiled / streamed variant for large D.

    grid = (batch_tile, phase, d_tile):
      phase 0: accumulate x[:, jTD] @ w1[jTD, :] into hacc (f32 scratch); at the
               last d-tile, run bias+ReLU, the two small bottleneck matmuls and
               store the decoder hidden g in scratch.
      phase 1: stream w4[:, jTD] column tiles and write out[:, jTD] = g @ w4 + b4.
    """
    ph = pl.program_id(1)
    j = pl.program_id(2)
    nd = pl.num_programs(2)

    @pl.when(ph == 0)
    def _phase0():
        @pl.when(j == 0)
        def _():
            hacc_ref[...] = jnp.zeros_like(hacc_ref)

        hacc_ref[...] += jnp.dot(x_ref[...].astype(jnp.bfloat16), w1_ref[...],
                                 preferred_element_type=jnp.float32)

        @pl.when(j == nd - 1)
        def _():
            h = jnp.maximum(hacc_ref[...] + b1_ref[...], 0.0)
            z = jnp.dot(h.astype(jnp.bfloat16), w2_ref[...],
                        preferred_element_type=jnp.float32) + b2_ref[...]
            g = jnp.dot(z.astype(jnp.bfloat16), w3_ref[...],
                        preferred_element_type=jnp.float32) + b3_ref[...]
            g_ref[...] = jnp.maximum(g, 0.0).astype(g_ref.dtype)

    @pl.when(ph == 1)
    def _phase1():
        y = jnp.dot(g_ref[...], w4_ref[...],
                    preferred_element_type=jnp.float32) + b4_ref[...]
        out_ref[...] = y.astype(out_ref.dtype)


# ----------------------------------------------------------------------------
# pallas_call wrappers
# ----------------------------------------------------------------------------
def _forward_resident(x2dp, p, TB, n_tiles, Bp, Dp, Hp, Zp, vmem_cap,
                      act_bytes, cost):
    w_bytes = 2 * (Dp * Hp + Hp * Zp + Zp * Hp + Hp * Dp)   # bf16 weights
    b_bytes = 4 * (2 * Hp + Zp + Dp)                        # f32 biases

    def build(single_buffer_weights):
        nbuf = 1 if single_buffer_weights else 2
        needed = nbuf * (w_bytes + b_bytes) + act_bytes
        vmem_limit = int(min(max(needed + (8 << 20), 16 << 20), vmem_cap))

        if single_buffer_weights:
            # Constant index map => block never changes; one buffer is enough.
            res = lambda shape: pl.BlockSpec(shape, lambda i: (0, 0),
                                             pipeline_mode=pl.Buffered(1))
        else:
            res = lambda shape: pl.BlockSpec(shape, lambda i: (0, 0))

        return pl.pallas_call(
            _ae_kernel_resident,
            out_shape=jax.ShapeDtypeStruct((Bp, Dp), jnp.float32),
            grid=(n_tiles,),
            in_specs=[
                pl.BlockSpec((TB, Dp), lambda i: (i, 0)),   # x tile (pipelined)
                res((Dp, Hp)), res((1, Hp)),                # w1, b1
                res((Hp, Zp)), res((1, Zp)),                # w2, b2
                res((Zp, Hp)), res((1, Hp)),                # w3, b3
                res((Hp, Dp)), res((1, Dp)),                # w4, b4
            ],
            out_specs=pl.BlockSpec((TB, Dp), lambda i: (i, 0)),
            compiler_params=pltpu.CompilerParams(
                dimension_semantics=("parallel",),
                vmem_limit_bytes=vmem_limit),
            cost_estimate=cost,
        )

    args = (x2dp, p["w1"], p["b1"], p["w2"], p["b2"],
            p["w3"], p["b3"], p["w4"], p["b4"])
    try:
        return build(single_buffer_weights=True)(*args)
    except Exception:
        # Fallback for jax versions without BlockSpec(pipeline_mode=...).
        return build(single_buffer_weights=False)(*args)


def _forward_d_tiled(x2dp, p, TB, n_tiles, Bp, Dp, Hp, Zp, vmem_cap,
                     d_tile, cost):
    # Resident small operands (w2/w3 + biases b1..b3), scratch, intermediates.
    small_bytes = 2 * 2 * (2 * Hp * Zp) + 2 * 4 * (2 * Hp + Zp)
    scratch_bytes = TB * Hp * 4 + TB * Hp * 2          # hacc f32 + g bf16
    inter_bytes = TB * (2 * Hp + Zp) * 4                # encoder/decoder temps

    per_td = (TB * 4 * 2        # x tile, double-buffered f32
              + TB * 4 * 2      # out tile, double-buffered f32
              + Hp * 2 * 2      # (TD, Hp) w1 tile, bf16, double-buffered
              + Hp * 2 * 2      # (Hp, TD) w4 tile, bf16, double-buffered
              + 4 * 2           # b4 tile
              + TB * 4          # y f32 intermediate
              + TB * 2)         # x bf16 cast
    budget = vmem_cap - small_bytes - scratch_bytes - inter_bytes - (6 << 20)
    td_max = max(budget // per_td, 128)
    if d_tile is not None:
        td_max = min(td_max, d_tile)
    td_max = min(td_max, Dp)

    # Largest multiple of 128 that divides Dp and fits the budget.
    units = Dp // 128
    t = max(1, min(td_max // 128, units))
    while t > 1 and units % t != 0:
        t -= 1
    TD = t * 128
    nd = Dp // TD

    needed = small_bytes + scratch_bytes + inter_bytes + per_td * TD
    vmem_limit = int(min(max(needed + (8 << 20), 16 << 20), vmem_cap))

    return pl.pallas_call(
        _ae_kernel_d_tiled,
        out_shape=jax.ShapeDtypeStruct((Bp, Dp), jnp.float32),
        grid=(n_tiles, 2, nd),
        in_specs=[
            # x: stream column tiles in phase 0, stay on the last tile in phase 1.
            pl.BlockSpec((TB, TD),
                         lambda i, ph, j, nd=nd: (i, j * (1 - ph) + (nd - 1) * ph)),
            # w1: stream row tiles in phase 0, stay on the last tile in phase 1.
            pl.BlockSpec((TD, Hp),
                         lambda i, ph, j, nd=nd: (j * (1 - ph) + (nd - 1) * ph, 0)),
            pl.BlockSpec((1, Hp), lambda i, ph, j: (0, 0)),     # b1 (resident)
            pl.BlockSpec((Hp, Zp), lambda i, ph, j: (0, 0)),    # w2 (resident)
            pl.BlockSpec((1, Zp), lambda i, ph, j: (0, 0)),     # b2 (resident)
            pl.BlockSpec((Zp, Hp), lambda i, ph, j: (0, 0)),    # w3 (resident)
            pl.BlockSpec((1, Hp), lambda i, ph, j: (0, 0)),     # b3 (resident)
            pl.BlockSpec((Hp, TD), lambda i, ph, j: (0, j * ph)),  # w4 column tiles
            pl.BlockSpec((1, TD), lambda i, ph, j: (0, j * ph)),   # b4 column tiles
        ],
        out_specs=pl.BlockSpec((TB, TD), lambda i, ph, j: (i, j * ph)),
        scratch_shapes=[pltpu.VMEM((TB, Hp), jnp.float32),   # hacc
                        pltpu.VMEM((TB, Hp), jnp.bfloat16)],  # g
        compiler_params=pltpu.CompilerParams(
            dimension_semantics=("parallel", "arbitrary", "arbitrary"),
            vmem_limit_bytes=vmem_limit),
        cost_estimate=cost,
    )(x2dp, p["w1"], p["b1"], p["w2"], p["b2"],
      p["w3"], p["b3"], p["w4"], p["b4"])


# ----------------------------------------------------------------------------
# public forward
# ----------------------------------------------------------------------------
def autoencoder_forward(x_nchw, prepared, *, force_d_tiling=False, d_tile=None):
    """Fused auto-encoder forward.

    x_nchw:   [B, C, H, W] float32 (PyTorch NCHW convention).
    prepared: output of prepare_params() (pre-padded bf16 weights).
    Returns the reconstruction with the same [B, C, H, W] shape.
    """
    B, C, H, W = x_nchw.shape
    D, Hd, Z, Dp, Hp, Zp = prepared["dims"]
    assert C * H * W == D, "input feature size does not match prepared params"
    x2d = x_nchw.reshape(B, D)   # row-major flatten == torch .view(B, -1)

    gen = _tpu_generation()
    # Usable VMEM budget: ~3/4 of physical (96 MiB on v5e/v6e, 48 MiB on v7x).
    vmem_cap = (_vmem_capacity_bytes(gen) * 3) // 4

    # Preferred batch tile per generation: v5e's 4x128^2 MXU saturates at
    # M=128-256 (and has 1 vst slot); v6e benefits from bigger tiles; v7x has
    # only 64 MiB VMEM so keep 256 and let the budget shrink it if needed.
    tb_pref = {"v5e": 256, "v6e": 512, "v7x": 256}.get(gen, 256)

    w_bytes = 2 * (Dp * Hp + Hp * Zp + Zp * Hp + Hp * Dp)   # bf16, single-buffered
    b_bytes = 4 * (2 * Hp + Zp + Dp)

    def act_bytes(tb):
        # x + out tiles double-buffered f32, plus f32/bf16 intermediates.
        return tb * (2 * 2 * Dp * 4 + 4 * (2 * Hp + Zp + Dp) + 2 * (Dp + 2 * Hp + Zp))

    # Shrink TB until the weight-resident footprint fits the budget.
    TB = tb_pref
    while TB > 8 and w_bytes + b_bytes + act_bytes(TB) > vmem_cap - (4 << 20):
        TB //= 2
    TB = max(TB, 8)

    # Even batch tiling (minimize zero-row padding); multiple of 8 (f32 sublanes).
    TB = min(TB, _round_up(B, 8))
    n_tiles = _cdiv(B, TB)
    # v7x has two TensorCores: give the "parallel" batch axis >= 2 grid steps
    # so megacore sharding can actually use both (no effect on v5e/v6e).
    if gen == "v7x" and n_tiles < 2 and B >= 16:
        n_tiles = 2
    TB = _round_up(_cdiv(B, n_tiles), 8)
    Bp = n_tiles * TB

    x2dp = jnp.pad(x2d, ((0, Bp - B), (0, Dp - D))).astype(jnp.float32)

    flops = 2 * Bp * (Dp * Hp + Hp * Zp + Zp * Hp + Hp * Dp)
    bytes_accessed = Bp * Dp * 8 + w_bytes + b_bytes
    cost = pl.CostEstimate(flops=flops, transcendentals=0,
                           bytes_accessed=bytes_accessed)

    use_resident = (not force_d_tiling) and (
        w_bytes + b_bytes + act_bytes(TB) <= vmem_cap - (4 << 20))

    if use_resident:
        out2d = _forward_resident(x2dp, prepared, TB, n_tiles, Bp, Dp, Hp, Zp,
                                  vmem_cap, act_bytes(TB), cost)
    else:
        out2d = _forward_d_tiled(x2dp, prepared, TB, n_tiles, Bp, Dp, Hp, Zp,
                                 vmem_cap, d_tile, cost)

    return out2d[:B, :D].reshape(B, C, H, W)


# ----------------------------------------------------------------------------
# parameter init + pure-JAX reference
# ----------------------------------------------------------------------------
def init_params(key, in_dim, hidden, bneck):
    """Deterministic PyTorch-Linear-style (uniform +-1/sqrt(fan_in)) init."""
    def linear(k, fan_in, fan_out):
        kw, kb = jax.random.split(k)
        bound = 1.0 / jnp.sqrt(float(fan_in))
        w = jax.random.uniform(kw, (fan_in, fan_out), jnp.float32, -bound, bound)
        b = jax.random.uniform(kb, (1, fan_out), jnp.float32, -bound, bound)
        return w, b

    k1, k2, k3, k4 = jax.random.split(key, 4)
    w1, b1 = linear(k1, in_dim, hidden)   # encoder layer 1
    w2, b2 = linear(k2, hidden, bneck)    # encoder -> bottleneck
    w3, b3 = linear(k3, bneck, hidden)    # decoder layer 1
    w4, b4 = linear(k4, hidden, in_dim)   # decoder -> reconstruction
    return (w1, b1, w2, b2, w3, b3, w4, b4)


def _reference_forward(x_nchw, params):
    """Plain-JAX f32 reference of the same forward, for correctness checks."""
    B, C, H, W = x_nchw.shape
    x = x_nchw.reshape(B, -1)
    w1, b1, w2, b2, w3, b3, w4, b4 = params
    h = jnp.maximum(x @ w1 + b1, 0.0)
    z = h @ w2 + b2
    g = jnp.maximum(z @ w3 + b3, 0.0)
    y = g @ w4 + b4
    return y.reshape(B, C, H, W)


if __name__ == "__main__":
    # Small shapes consistent with an image auto-encoder forward.
    B, C, H, W = 2, 4, 16, 16
    D = C * H * W          # 1024 flattened features
    HIDDEN = 128
    BNECK = 32             # encoder.bneck_size

    key = jax.random.PRNGKey(0)
    kx, kp = jax.random.split(key)
    x = jax.random.normal(kx, (B, C, H, W), jnp.float32)
    params = init_params(kp, D, HIDDEN, BNECK)
    prepared = prepare_params(params)   # one-time pad + bf16 cast

    ref = _reference_forward(x, params)

    # 1) Weight-resident fused path (the common case for this D).
    out = jax.block_until_ready(autoencoder_forward(x, prepared))
    assert out.shape == (B, C, H, W)
    # bf16 MXU operands (f32 accumulation) -> loosened tolerance vs f32 ref.
    assert jnp.allclose(out, ref, atol=2e-2, rtol=2e-2), (
        float(jnp.max(jnp.abs(out - ref))))

    # 2) K-tiled / streamed-weight path, forced with a small D tile so the
    #    large-D code path is exercised and validated too.
    out_t = jax.block_until_ready(
        autoencoder_forward(x, prepared, force_d_tiling=True, d_tile=256))
    assert out_t.shape == (B, C, H, W)
    assert jnp.allclose(out_t, ref, atol=2e-2, rtol=2e-2), (
        float(jnp.max(jnp.abs(out_t - ref))))

    print("KERNEL_OK")
</pallas_src>

<mosaic_0001>
module attributes {stable_mosaic.version = 11 : i64} {
  func.func @_ae_kernel_resident(%arg0: i32, %arg1: memref<8x1024xf32, #tpu.memory_space<vmem>>, %arg2: memref<1024x128xbf16, #tpu.memory_space<vmem>>, %arg3: memref<1x128xf32, #tpu.memory_space<vmem>>, %arg4: memref<128x128xbf16, #tpu.memory_space<vmem>>, %arg5: memref<1x128xf32, #tpu.memory_space<vmem>>, %arg6: memref<128x128xbf16, #tpu.memory_space<vmem>>, %arg7: memref<1x128xf32, #tpu.memory_space<vmem>>, %arg8: memref<128x1024xbf16, #tpu.memory_space<vmem>>, %arg9: memref<1x1024xf32, #tpu.memory_space<vmem>>, %arg10: memref<8x1024xf32, #tpu.memory_space<vmem>>) attributes {dimension_semantics = [#tpu.dimension_semantics<parallel>], iteration_bounds = array<i64: 1>, scalar_prefetch = 0 : i64, scratch_operands = 0 : i64, tpu.core_type = #tpu.core_type<tc>, window_params = [{transform_indices = @transform_0, window_bounds = array<i64: 8, 1024>}, {pipeline_mode = #tpu.pipeline_mode<synchronous>, transform_indices = @transform_1, window_bounds = array<i64: 1024, 128>}, {pipeline_mode = #tpu.pipeline_mode<synchronous>, transform_indices = @transform_2, window_bounds = array<i64: 1, 128>}, {pipeline_mode = #tpu.pipeline_mode<synchronous>, transform_indices = @transform_3, window_bounds = array<i64: 128, 128>}, {pipeline_mode = #tpu.pipeline_mode<synchronous>, transform_indices = @transform_4, window_bounds = array<i64: 1, 128>}, {pipeline_mode = #tpu.pipeline_mode<synchronous>, transform_indices = @transform_5, window_bounds = array<i64: 128, 128>}, {pipeline_mode = #tpu.pipeline_mode<synchronous>, transform_indices = @transform_6, window_bounds = array<i64: 1, 128>}, {pipeline_mode = #tpu.pipeline_mode<synchronous>, transform_indices = @transform_7, window_bounds = array<i64: 128, 1024>}, {pipeline_mode = #tpu.pipeline_mode<synchronous>, transform_indices = @transform_8, window_bounds = array<i64: 1, 1024>}, {transform_indices = @transform_9, window_bounds = array<i64: 8, 1024>}]} {
    %c0 = arith.constant 0 : index
    %c0_0 = arith.constant 0 : index
    %0 = vector.load %arg1[%c0, %c0_0] : memref<8x1024xf32, #tpu.memory_space<vmem>>, vector<8x1024xf32>
    %1 = arith.truncf %0 : vector<8x1024xf32> to vector<8x1024xbf16>
    %c0_1 = arith.constant 0 : index
    %c0_2 = arith.constant 0 : index
    %2 = vector.load %arg2[%c0_1, %c0_2] : memref<1024x128xbf16, #tpu.memory_space<vmem>>, vector<1024x128xbf16>
    %cst = arith.constant dense<0.000000e+00> : vector<8x128xf32>
    %3 = tpu.matmul %1, %2, %cst {dimension_numbers = #tpu.dot_dimension_numbers<[1], [0], [0], [1], [0, 0, 1, 1], [], []>} : vector<8x1024xbf16>, vector<1024x128xbf16>, vector<8x128xf32> -> vector<8x128xf32>
    %c0_3 = arith.constant 0 : index
    %c0_4 = arith.constant 0 : index
    %4 = vector.load %arg3[%c0_3, %c0_4] : memref<1x128xf32, #tpu.memory_space<vmem>>, vector<1x128xf32>
    %5 = vector.broadcast %4 : vector<1x128xf32> to vector<8x128xf32>
    %6 = arith.addf %3, %5 : vector<8x128xf32>
    %cst_5 = arith.constant 0.000000e+00 : f32
    %7 = vector.broadcast %cst_5 : f32 to vector<8x128xf32>
    %8 = arith.maximumf %6, %7 : vector<8x128xf32>
    %9 = arith.truncf %8 : vector<8x128xf32> to vector<8x128xbf16>
    %c0_6 = arith.constant 0 : index
    %c0_7 = arith.constant 0 : index
    %10 = vector.load %arg4[%c0_6, %c0_7] : memref<128x128xbf16, #tpu.memory_space<vmem>>, vector<128x128xbf16>
    %cst_8 = arith.constant dense<0.000000e+00> : vector<8x128xf32>
    %11 = tpu.matmul %9, %10, %cst_8 {dimension_numbers = #tpu.dot_dimension_numbers<[1], [0], [0], [1], [0, 0, 1, 1], [], []>} : vector<8x128xbf16>, vector<128x128xbf16>, vector<8x128xf32> -> vector<8x128xf32>
    %c0_9 = arith.constant 0 : index
    %c0_10 = arith.constant 0 : index
    %12 = vector.load %arg5[%c0_9, %c0_10] : memref<1x128xf32, #tpu.memory_space<vmem>>, vector<1x128xf32>
    %13 = vector.broadcast %12 : vector<1x128xf32> to vector<8x128xf32>
    %14 = arith.addf %11, %13 : vector<8x128xf32>
    %15 = arith.truncf %14 : vector<8x128xf32> to vector<8x128xbf16>
    %c0_11 = arith.constant 0 : index
    %c0_12 = arith.constant 0 : index
    %16 = vector.load %arg6[%c0_11, %c0_12] : memref<128x128xbf16, #tpu.memory_space<vmem>>, vector<128x128xbf16>
    %cst_13 = arith.constant dense<0.000000e+00> : vector<8x128xf32>
    %17 = tpu.matmul %15, %16, %cst_13 {dimension_numbers = #tpu.dot_dimension_numbers<[1], [0], [0], [1], [0, 0, 1, 1], [], []>} : vector<8x128xbf16>, vector<128x128xbf16>, vector<8x128xf32> -> vector<8x128xf32>
    %c0_14 = arith.constant 0 : index
    %c0_15 = arith.constant 0 : index
    %18 = vector.load %arg7[%c0_14, %c0_15] : memref<1x128xf32, #tpu.memory_space<vmem>>, vector<1x128xf32>
    %19 = vector.broadcast %18 : vector<1x128xf32> to vector<8x128xf32>
    %20 = arith.addf %17, %19 : vector<8x128xf32>
    %cst_16 = arith.constant 0.000000e+00 : f32
    %21 = vector.broadcast %cst_16 : f32 to vector<8x128xf32>
    %22 = arith.maximumf %20, %21 : vector<8x128xf32>
    %23 = arith.truncf %22 : vector<8x128xf32> to vector<8x128xbf16>
    %c0_17 = arith.constant 0 : index
    %c0_18 = arith.constant 0 : index
    %24 = vector.load %arg8[%c0_17, %c0_18] : memref<128x1024xbf16, #tpu.memory_space<vmem>>, vector<128x1024xbf16>
    %cst_19 = arith.constant dense<0.000000e+00> : vector<8x1024xf32>
    %25 = tpu.matmul %23, %24, %cst_19 {dimension_numbers = #tpu.dot_dimension_numbers<[1], [0], [0], [1], [0, 0, 1, 1], [], []>} : vector<8x128xbf16>, vector<128x1024xbf16>, vector<8x1024xf32> -> vector<8x1024xf32>
    %c0_20 = arith.constant 0 : index
    %c0_21 = arith.constant 0 : index
    %26 = vector.load %arg9[%c0_20, %c0_21] : memref<1x1024xf32, #tpu.memory_space<vmem>>, vector<1x1024xf32>
    %27 = vector.broadcast %26 : vector<1x1024xf32> to vector<8x1024xf32>
    %28 = arith.addf %25, %27 : vector<8x1024xf32>
    %c0_22 = arith.constant 0 : index
    %c0_23 = arith.constant 0 : index
    %29 = vector.load %arg10[%c0_22, %c0_23] : memref<8x1024xf32, #tpu.memory_space<vmem>>, vector<8x1024xf32>
    tpu.vector_store %arg10[%c0_22, %c0_23], %28 {strides = array<i32>} : memref<8x1024xf32, #tpu.memory_space<vmem>>, vector<8x1024xf32>,
    return
  }
  func.func @transform_0(%arg0: i32) -> (i32, i32) {
    %c0_i32 = arith.constant 0 : i32
    %c0_i32_0 = arith.constant 0 : i32
    return %arg0, %c0_i32 : i32, i32
  }
  func.func @transform_1(%arg0: i32) -> (i32, i32) {
    %c0_i32 = arith.constant 0 : i32
    %c0_i32_0 = arith.constant 0 : i32
    %c0_i32_1 = arith.constant 0 : i32
    return %c0_i32, %c0_i32_0 : i32, i32
  }
  func.func @transform_2(%arg0: i32) -> (i32, i32) {
    %c0_i32 = arith.constant 0 : i32
    %c0_i32_0 = arith.constant 0 : i32
    %c0_i32_1 = arith.constant 0 : i32
    return %c0_i32, %c0_i32_0 : i32, i32
  }
  func.func @transform_3(%arg0: i32) -> (i32, i32) {
    %c0_i32 = arith.constant 0 : i32
    %c0_i32_0 = arith.constant 0 : i32
    %c0_i32_1 = arith.constant 0 : i32
    return %c0_i32, %c0_i32_0 : i32, i32
  }
  func.func @transform_4(%arg0: i32) -> (i32, i32) {
    %c0_i32 = arith.constant 0 : i32
    %c0_i32_0 = arith.constant 0 : i32
    %c0_i32_1 = arith.constant 0 : i32
    return %c0_i32, %c0_i32_0 : i32, i32
  }
  func.func @transform_5(%arg0: i32) -> (i32, i32) {
    %c0_i32 = arith.constant 0 : i32
    %c0_i32_0 = arith.constant 0 : i32
    %c0_i32_1 = arith.constant 0 : i32
    return %c0_i32, %c0_i32_0 : i32, i32
  }
  func.func @transform_6(%arg0: i32) -> (i32, i32) {
    %c0_i32 = arith.constant 0 : i32
    %c0_i32_0 = arith.constant 0 : i32
    %c0_i32_1 = arith.constant 0 : i32
    return %c0_i32, %c0_i32_0 : i32, i32
  }
  func.func @transform_7(%arg0: i32) -> (i32, i32) {
    %c0_i32 = arith.constant 0 : i32
    %c0_i32_0 = arith.constant 0 : i32
    %c0_i32_1 = arith.constant 0 : i32
    return %c0_i32, %c0_i32_0 : i32, i32
  }
  func.func @transform_8(%arg0: i32) -> (i32, i32) {
    %c0_i32 = arith.constant 0 : i32
    %c0_i32_0 = arith.constant 0 : i32
    %c0_i32_1 = arith.constant 0 : i32
    return %c0_i32, %c0_i32_0 : i32, i32
  }
  func.func @transform_9(%arg0: i32) -> (i32, i32) {
    %c0_i32 = arith.constant 0 : i32
    %c0_i32_0 = arith.constant 0 : i32
    return %arg0, %c0_i32 : i32, i32
  }
}

module attributes {stable_mosaic.version = 11 : i64} {
  func.func @_ae_kernel_resident(%arg0: i32, %arg1: memref<8x1024xf32, #tpu.memory_space<vmem>>, %arg2: memref<1024x128xbf16, #tpu.memory_space<vmem>>, %arg3: memref<1x128xf32, #tpu.memory_space<vmem>>, %arg4: memref<128x128xbf16, #tpu.memory_space<vmem>>, %arg5: memref<1x128xf32, #tpu.memory_space<vmem>>, %arg6: memref<128x128xbf16, #tpu.memory_space<vmem>>, %arg7: memref<1x128xf32, #tpu.memory_space<vmem>>, %arg8: memref<128x1024xbf16, #tpu.memory_space<vmem>>, %arg9: memref<1x1024xf32, #tpu.memory_space<vmem>>, %arg10: memref<8x1024xf32, #tpu.memory_space<vmem>>) attributes {dimension_semantics = [#tpu.dimension_semantics<parallel>], iteration_bounds = array<i64: 1>, scalar_prefetch = 0 : i64, scratch_operands = 0 : i64, tpu.core_type = #tpu.core_type<tc>, window_params = [{transform_indices = @transform_0, window_bounds = array<i64: 8, 1024>}, {pipeline_mode = #tpu.pipeline_mode<synchronous>, transform_indices = @transform_1, window_bounds = array<i64: 1024, 128>}, {pipeline_mode = #tpu.pipeline_mode<synchronous>, transform_indices = @transform_2, window_bounds = array<i64: 1, 128>}, {pipeline_mode = #tpu.pipeline_mode<synchronous>, transform_indices = @transform_3, window_bounds = array<i64: 128, 128>}, {pipeline_mode = #tpu.pipeline_mode<synchronous>, transform_indices = @transform_4, window_bounds = array<i64: 1, 128>}, {pipeline_mode = #tpu.pipeline_mode<synchronous>, transform_indices = @transform_5, window_bounds = array<i64: 128, 128>}, {pipeline_mode = #tpu.pipeline_mode<synchronous>, transform_indices = @transform_6, window_bounds = array<i64: 1, 128>}, {pipeline_mode = #tpu.pipeline_mode<synchronous>, transform_indices = @transform_7, window_bounds = array<i64: 128, 1024>}, {pipeline_mode = #tpu.pipeline_mode<synchronous>, transform_indices = @transform_8, window_bounds = array<i64: 1, 1024>}, {transform_indices = @transform_9, window_bounds = array<i64: 8, 1024>}]} {
    %c0 = arith.constant 0 : index
    %c0_0 = arith.constant 0 : index
    %0 = vector.load %arg1[%c0, %c0_0] : memref<8x1024xf32, #tpu.memory_space<vmem>>, vector<8x1024xf32>
    %1 = arith.truncf %0 : vector<8x1024xf32> to vector<8x1024xbf16>
    %c0_1 = arith.constant 0 : index
    %c0_2 = arith.constant 0 : index
    %2 = vector.load %arg2[%c0_1, %c0_2] : memref<1024x128xbf16, #tpu.memory_space<vmem>>, vector<1024x128xbf16>
    %cst = arith.constant dense<0.000000e+00> : vector<8x128xf32>
    %3 = tpu.matmul %1, %2, %cst {dimension_numbers = #tpu.dot_dimension_numbers<[1], [0], [0], [1], [0, 0, 1, 1], [], []>} : vector<8x1024xbf16>, vector<1024x128xbf16>, vector<8x128xf32> -> vector<8x128xf32>
    %c0_3 = arith.constant 0 : index
    %c0_4 = arith.constant 0 : index
    %4 = vector.load %arg3[%c0_3, %c0_4] : memref<1x128xf32, #tpu.memory_space<vmem>>, vector<1x128xf32>
    %5 = vector.broadcast %4 : vector<1x128xf32> to vector<8x128xf32>
    %6 = arith.addf %3, %5 : vector<8x128xf32>
    %cst_5 = arith.constant 0.000000e+00 : f32
    %7 = vector.broadcast %cst_5 : f32 to vector<8x128xf32>
    %8 = arith.maximumf %6, %7 : vector<8x128xf32>
    %9 = arith.truncf %8 : vector<8x128xf32> to vector<8x128xbf16>
    %c0_6 = arith.constant 0 : index
    %c0_7 = arith.constant 0 : index
    %10 = vector.load %arg4[%c0_6, %c0_7] : memref<128x128xbf16, #tpu.memory_space<vmem>>, vector<128x128xbf16>
    %cst_8 = arith.constant dense<0.000000e+00> : vector<8x128xf32>
    %11 = tpu.matmul %9, %10, %cst_8 {dimension_numbers = #tpu.dot_dimension_numbers<[1], [0], [0], [1], [0, 0, 1, 1], [], []>} : vector<8x128xbf16>, vector<128x128xbf16>, vector<8x128xf32> -> vector<8x128xf32>
    %c0_9 = arith.constant 0 : index
    %c0_10 = arith.constant 0 : index
    %12 = vector.load %arg5[%c0_9, %c0_10] : memref<1x128xf32, #tpu.memory_space<vmem>>, vector<1x128xf32>
    %13 = vector.broadcast %12 : vector<1x128xf32> to vector<8x128xf32>
    %14 = arith.addf %11, %13 : vector<8x128xf32>
    %15 = arith.truncf %14 : vector<8x128xf32> to vector<8x128xbf16>
    %c0_11 = arith.constant 0 : index
    %c0_12 = arith.constant 0 : index
    %16 = vector.load %arg6[%c0_11, %c0_12] : memref<128x128xbf16, #tpu.memory_space<vmem>>, vector<128x128xbf16>
    %cst_13 = arith.constant dense<0.000000e+00> : vector<8x128xf32>
    %17 = tpu.matmul %15, %16, %cst_13 {dimension_numbers = #tpu.dot_dimension_numbers<[1], [0], [0], [1], [0, 0, 1, 1], [], []>} : vector<8x128xbf16>, vector<128x128xbf16>, vector<8x128xf32> -> vector<8x128xf32>
    %c0_14 = arith.constant 0 : index
    %c0_15 = arith.constant 0 : index
    %18 = vector.load %arg7[%c0_14, %c0_15] : memref<1x128xf32, #tpu.memory_space<vmem>>, vector<1x128xf32>
    %19 = vector.broadcast %18 : vector<1x128xf32> to vector<8x128xf32>
    %20 = arith.addf %17, %19 : vector<8x128xf32>
    %cst_16 = arith.constant 0.000000e+00 : f32
    %21 = vector.broadcast %cst_16 : f32 to vector<8x128xf32>
    %22 = arith.maximumf %20, %21 : vector<8x128xf32>
    %23 = arith.truncf %22 : vector<8x128xf32> to vector<8x128xbf16>
    %c0_17 = arith.constant 0 : index
    %c0_18 = arith.constant 0 : index
    %24 = vector.load %arg8[%c0_17, %c0_18] : memref<128x1024xbf16, #tpu.memory_space<vmem>>, vector<128x1024xbf16>
    %cst_19 = arith.constant dense<0.000000e+00> : vector<8x1024xf32>
    %25 = tpu.matmul %23, %24, %cst_19 {dimension_numbers = #tpu.dot_dimension_numbers<[1], [0], [0], [1], [0, 0, 1, 1], [], []>} : vector<8x128xbf16>, vector<128x1024xbf16>, vector<8x1024xf32> -> vector<8x1024xf32>
    %c0_20 = arith.constant 0 : index
    %c0_21 = arith.constant 0 : index
    %26 = vector.load %arg9[%c0_20, %c0_21] : memref<1x1024xf32, #tpu.memory_space<vmem>>, vector<1x1024xf32>
    %27 = vector.broadcast %26 : vector<1x1024xf32> to vector<8x1024xf32>
    %28 = arith.addf %25, %27 : vector<8x1024xf32>
    %c0_22 = arith.constant 0 : index
    %c0_23 = arith.constant 0 : index
    %29 = vector.load %arg10[%c0_22, %c0_23] : memref<8x1024xf32, #tpu.memory_space<vmem>>, vector<8x1024xf32>
    tpu.vector_store %arg10[%c0_22, %c0_23], %28 {strides = array<i32>} : memref<8x1024xf32, #tpu.memory_space<vmem>>, vector<8x1024xf32>,
    return
  }
  func.func @transform_0(%arg0: i32) -> (i32, i32) {
    %c0_i32 = arith.constant 0 : i32
    %c0_i32_0 = arith.constant 0 : i32
    return %arg0, %c0_i32 : i32, i32
  }
  func.func @transform_1(%arg0: i32) -> (i32, i32) {
    %c0_i32 = arith.constant 0 : i32
    %c0_i32_0 = arith.constant 0 : i32
    %c0_i32_1 = arith.constant 0 : i32
    return %c0_i32, %c0_i32_0 : i32, i32
  }
  func.func @transform_2(%arg0: i32) -> (i32, i32) {
    %c0_i32 = arith.constant 0 : i32
    %c0_i32_0 = arith.constant 0 : i32
    %c0_i32_1 = arith.constant 0 : i32
    return %c0_i32, %c0_i32_0 : i32, i32
  }
  func.func @transform_3(%arg0: i32) -> (i32, i32) {
    %c0_i32 = arith.constant 0 : i32
    %c0_i32_0 = arith.constant 0 : i32
    %c0_i32_1 = arith.constant 0 : i32
    return %c0_i32, %c0_i32_0 : i32, i32
  }
  func.func @transform_4(%arg0: i32) -> (i32, i32) {
    %c0_i32 = arith.constant 0 : i32
    %c0_i32_0 = arith.constant 0 : i32
    %c0_i32_1 = arith.constant 0 : i32
    return %c0_i32, %c0_i32_0 : i32, i32
  }
  func.func @transform_5(%arg0: i32) -> (i32, i32) {
    %c0_i32 = arith.constant 0 : i32
    %c0_i32_0 = arith.constant 0 : i32
    %c0_i32_1 = arith.constant 0 : i32
    return %c0_i32, %c0_i32_0 : i32, i32
  }
  func.func @transform_6(%arg0: i32) -> (i32, i32) {
    %c0_i32 = arith.constant 0 : i32
    %c0_i32_0 = arith.constant 0 : i32
    %c0_i32_1 = arith.constant 0 : i32
    return %c0_i32, %c0_i32_0 : i32, i32
  }
  func.func @transform_7(%arg0: i32) -> (i32, i32) {
    %c0_i32 = arith.constant 0 : i32
    %c0_i32_0 = arith.constant 0 : i32
    %c0_i32_1 = arith.constant 0 : i32
    return %c0_i32, %c0_i32_0 : i32, i32
  }
  func.func @transform_8(%arg0: i32) -> (i32, i32) {
    %c0_i32 = arith.constant 0 : i32
    %c0_i32_0 = arith.constant 0 : i32
    %c0_i32_1 = arith.constant 0 : i32
    return %c0_i32, %c0_i32_0 : i32, i32
  }
  func.func @transform_9(%arg0: i32) -> (i32, i32) {
    %c0_i32 = arith.constant 0 : i32
    %c0_i32_0 = arith.constant 0 : i32
    return %arg0, %c0_i32 : i32, i32
  }
}

</mosaic_0001>

<bundles_post_ra>
// kernel: tpu_custom_call.1
= control target key start
LH: loop header
LB: loop body
LE: loop exit
PB: predicated region body
PF: predicated region fallthrough
CT: control target
= control target key end

     0   :  { %14 = vsyncpa [#allocation3], 0  ;;  %s2325_s0 = inlined_call_operand.hbm [shape: f32[8,1024], index: 0, kind: input, shape index: {}]   ;;  %s2326_s1 = inlined_call_operand.hbm [shape: bf16[1024,128], index: 1, kind: input, shape index: {}]   ;;  %s2327_s2 = inlined_call_operand.vmem [shape: f32[1,128], index: 2, kind: input, shape index: {}]   ;;  %s2328_s3 = inlined_call_operand.hbm [shape: bf16[128,128], index: 3, kind: input, shape index: {}]   ;;  %s2329_s4 = inlined_call_operand.vmem [shape: f32[1,128], index: 4, kind: input, shape index: {}]   ;;  %s2330_s5 = inlined_call_operand.hbm [shape: bf16[128,128], index: 5, kind: input, shape index: {}]   ;;  %s2331_s6 = inlined_call_operand.vmem [shape: f32[1,128], index: 6, kind: input, shape index: {}]   ;;  %s2332_s7 = inlined_call_operand.hbm [shape: bf16[128,1024], index: 7, kind: input, shape index: {}]   ;;  %s2333_s8 = inlined_call_operand.vmem [shape: f32[1,1024], index: 8, kind: input, shape index: {}]   ;;  %s2334_s9 = inlined_call_operand.hbm [shape: f32[8,1024], index: 9, kind: output, shape index: {}]  }
   0x1   :  { %15 = vsyncpa [#allocation6], 0 }
   0x2   :  { %16 = vsyncpa [#allocation9], 0 }
   0x3   :  { %17 = vsyncpa [#allocation4], 0  ;;  %s2163_s30 = smov [#allocation5]   ;;  %s2023_s13 = scalar_lea.hbm %s2326_s1, 8192 }
   0x4   :  { %s33_s10 = sshll.u32 %s2163_s30, 4  ;;  %p2024_p0 = scmp.ne.s32.totalorder %s2326_s1, %s2023_s13  ;;  %s34_s10 = int_to_ptr.vmem [resolvable:$true] %s33_s10 }
   0x5   :  { %p2027_p1 = scmp.lt.u32.totalorder %s2023_s13, %s2326_s1 }
   0x7   :  { %p2029_p2 = pnand %p2027_p1, %p2024_p0 }
   0x9   :  { %2032 = shalt.err (!%p2029_p2)
}
   0xa   :  { %s2033_s18 = scalar_lea.vmem %s34_s10, 8192  ;;  %p2038_p4 = scmp.lt.s32.totalorder %s34_s10, %s34_s10 }
   0xb   :  { %p2034_p3 = scmp.ne.s32.totalorder %s34_s10, %s2033_s18  ;;  %p2039_p5 = scmp.lt.s32.totalorder %s2033_s18, %s2033_s18 }
   0xd   :  { %p2040_p6 = por %p2039_p5, %p2038_p4 }
   0xf   :  { %p2041_p7 = pnand %p2040_p6, %p2034_p3 }
  0x11   :  { %2044 = shalt.err (!%p2041_p7)
}
  0x12   :  { %s2164_s19 = smov 64   ;;  %s2165_s20 = smov 4  }
  0x13   :  { %39 = dma.hbm_to_vmem [thread:$0]  %s2326_s1, 8192, %s34_s10, [#allocation6], %s2164_s19, %s2164_s19, %s2165_s20  }
  0x14   :  { %s2166_s23 = smov [#allocation8]   ;;  %s2167_s25 = smov [#allocation2]  }
  0x15   :  { %s61_s24 = sshll.u32 %s2166_s23, 4  ;;  %s24_s26 = sshll.u32 %s2167_s25, 4  ;;  %s62_s24 = int_to_ptr.vmem [resolvable:$true] %s61_s24  ;;  %s25_s26 = int_to_ptr.vmem [resolvable:$true] %s24_s26 }
  0x16   :  { %s2045_s29 = scalar_lea.hbm %s2330_s5, 1024 }
  0x17   :  { %p2046_p8 = scmp.ne.s32.totalorder %s2330_s5, %s2045_s29  ;;  %p2049_p9 = scmp.lt.u32.totalorder %s2045_s29, %s2330_s5 }
  0x19   :  { %p2051_p10 = pnand %p2049_p9, %p2046_p8 }
  0x1b   :  { %2054 = shalt.err (!%p2051_p10)
}
  0x1c   :  { %s2055_s1 = scalar_lea.vmem %s62_s24, 1024  ;;  %p2060_p12 = scmp.lt.s32.totalorder %s62_s24, %s62_s24 }
  0x1d   :  { %p2056_p11 = scmp.ne.s32.totalorder %s62_s24, %s2055_s1  ;;  %p2061_p13 = scmp.lt.s32.totalorder %s2055_s1, %s2055_s1 }
  0x1f   :  { %p2062_p0 = por %p2061_p13, %p2060_p12 }
  0x21   :  { %p2063_p1 = pnand %p2062_p0, %p2056_p11 }
  0x23   :  { %2066 = shalt.err (!%p2063_p1)
}
  0x24   :  { %67 = dma.hbm_to_vmem [thread:$0]  %s2330_s5, 1024, %s62_s24, [#allocation9], %s2164_s19, %s2164_s19, %s2165_s20  }
  0x25   :  { %s2067_s17 = scalar_lea.hbm %s2325_s0, 1024 }
  0x26   :  { %p2068_p2 = scmp.ne.s32.totalorder %s2325_s0, %s2067_s17  ;;  %p2071_p3 = scmp.lt.u32.totalorder %s2067_s17, %s2325_s0 }
  0x28   :  { %p2073_p4 = pnand %p2071_p3, %p2068_p2 }
  0x2a   :  { %2076 = shalt.err (!%p2073_p4)
}
  0x2b   :  { %s2077_s25 = scalar_lea.vmem %s25_s26, 1024  ;;  %p2082_p6 = scmp.lt.s32.totalorder %s25_s26, %s25_s26 }
  0x2c   :  { %p2078_p5 = scmp.ne.s32.totalorder %s25_s26, %s2077_s25  ;;  %p2083_p7 = scmp.lt.s32.totalorder %s2077_s25, %s2077_s25 }
  0x2e   :  { %p2084_p8 = por %p2083_p7, %p2082_p6 }
  0x30   :  { %p2085_p9 = pnand %p2084_p8, %p2078_p5 }
  0x32   :  { %2088 = shalt.err (!%p2085_p9)
}
  0x33   :  { %27 = dma.hbm_to_vmem [thread:$0]  %s2325_s0, 1024, %s25_s26, [#allocation3]  }
  0x34   :  { %s2168_s27 = smov [#allocation7]   ;;  %s2169_s29 = smov [#allocation10]  }
  0x35   :  { %s47_s28 = sshll.u32 %s2168_s27, 4  ;;  %s75_s30 = sshll.u32 %s2169_s29, 4  ;;  %s48_s28 = int_to_ptr.vmem [resolvable:$true] %s47_s28  ;;  %s76_s30 = int_to_ptr.vmem [resolvable:$true] %s75_s30 }
  0x36   :  { %s2089_s13 = scalar_lea.hbm %s2328_s3, 1024 }
  0x37   :  { %p2090_p10 = scmp.ne.s32.totalorder %s2328_s3, %s2089_s13  ;;  %p2093_p11 = scmp.lt.u32.totalorder %s2089_s13, %s2328_s3 }
  0x39   :  { %p2095_p12 = pnand %p2093_p11, %p2090_p10 }
  0x3b   :  { %2098 = shalt.err (!%p2095_p12)
}
  0x3c   :  { %s2099_s0 = scalar_lea.vmem %s48_s28, 1024  ;;  %p2104_p0 = scmp.lt.s32.totalorder %s48_s28, %s48_s28 }
  0x3d   :  { %p2100_p13 = scmp.ne.s32.totalorder %s48_s28, %s2099_s0  ;;  %p2105_p1 = scmp.lt.s32.totalorder %s2099_s0, %s2099_s0 }
  0x3f   :  { %p2106_p2 = por %p2105_p1, %p2104_p0 }
  0x41   :  { %p2107_p3 = pnand %p2106_p2, %p2100_p13 }
  0x43   :  { %2110 = shalt.err (!%p2107_p3)
}
  0x44   :  { %53 = dma.hbm_to_vmem [thread:$0]  %s2328_s3, 1024, %s48_s28, [#allocation6], %s2164_s19, %s2164_s19, %s2165_s20  }
  0x45   :  { %s2111_s21 = scalar_lea.hbm %s2332_s7, 8192 }
  0x46   :  { %p2112_p4 = scmp.ne.s32.totalorder %s2332_s7, %s2111_s21  ;;  %p2115_p5 = scmp.lt.u32.totalorder %s2111_s21, %s2332_s7 }
  0x48   :  { %p2117_p6 = pnand %p2115_p5, %p2112_p4 }
  0x4a   :  { %2120 = shalt.err (!%p2117_p6)
}
  0x4b   :  { %s2121_s24 = scalar_lea.vmem %s76_s30, 8192  ;;  %p2126_p8 = scmp.lt.s32.totalorder %s76_s30, %s76_s30 }
  0x4c   :  { %p2122_p7 = scmp.ne.s32.totalorder %s76_s30, %s2121_s24  ;;  %p2127_p9 = scmp.lt.s32.totalorder %s2121_s24, %s2121_s24 }
  0x4e   :  { %p2128_p10 = por %p2127_p9, %p2126_p8 }
  0x50   :  { %p2129_p11 = pnand %p2128_p10, %p2122_p7 }
  0x52   :  { %2132 = shalt.err (!%p2129_p11)
}
  0x53   :  { %s2170_s3 = smov 512   ;;  %s2171_s19 = smov 32  }
  0x54   :  { %81 = dma.hbm_to_vmem [thread:$0]  %s2332_s7, 8192, %s76_s30, [#allocation9], %s2170_s3, %s2170_s3, %s2171_s19  }
  0x55   :  { %2155 = dma.done.wait [#allocation3], 1024  }
  0x56   :  { %2156 = vsyncadd [#allocation3], 4294966272 }
  0x57   :  { %2157 = dma.done.wait [#allocation6], 9216  }
  0x58   :  { %2158 = vsyncadd [#allocation6], 4294958080 }
  0x59   :  { %2159 = dma.done.wait [#allocation9], 9216  }
  0x5a   :  { %2160 = vsyncadd [#allocation9], 4294958080  ;;  %v1943_v0 = vld [vmem:[#allocation5 + $0x40] sm:$0xff]   ;;  %v1947_v4 = vld [vmem:[#allocation5 + $0x48] sm:$0xff]   ;;  %vm2173_vm0 = vmmov 0  }
  0x5b   :  { %v1944_v1 = vld [vmem:[#allocation5 + $0xc0] sm:$0xff]   ;;  %1784 = vmatprep.subr.bf16.mxu0 %v1943_v0  ;;  %v1948_v5 = vld [vmem:[#allocation5 + $0xc8] sm:$0xff]   ;;  %v1951_v8 = vld [vmem:[#allocation5 + $0x50] sm:$0xff]  }
  0x5c   :  { %v1945_v2 = vld [vmem:[#allocation5] sm:$0xff]   ;;  %1806 = vmatprep.subr.bf16.mxu1 %v1944_v1  ;;  %v1949_v6 = vld [vmem:[#allocation5 + $0x8] sm:$0xff]   ;;  %v1952_v9 = vld [vmem:[#allocation5 + $0xd0] sm:$0xff]  }
  0x5d   :  { %v1946_v3 = vld [vmem:[#allocation5 + $0x80] sm:$0xff]   ;;  %1785 = vmatpush3.bf16.msra.mxu0 %v1945_v2  ;;  %v1950_v7 = vld [vmem:[#allocation5 + $0x88] sm:$0xff]   ;;  %v1953_v10 = vld [vmem:[#allocation5 + $0x10] sm:$0xff]  }
  0x5e   :  { %1807 = vmatpush3.bf16.msra.mxu1 %v1946_v3  ;;  %1786 = vmatprep.subr.bf16.mxu0 %v1947_v4  ;;  %v1954_v11 = vld [vmem:[#allocation5 + $0x90] sm:$0xff]   ;;  %v1955_v12 = vld [vmem:[#allocation5 + $0x58] sm:$0xff]   ;;  %v1959_v16 = vld [vmem:[#allocation5 + $0x60] sm:$0xff]  }
  0x5f   :  { %1808 = vmatprep.subr.bf16.mxu1 %v1948_v5  ;;  %v1956_v13 = vld [vmem:[#allocation5 + $0xd8] sm:$0xff]   ;;  %v1960_v17 = vld [vmem:[#allocation5 + $0xe0] sm:$0xff]   ;;  %v1963_v20 = vld [vmem:[#allocation5 + $0x68] sm:$0xff]  }
  0x60   :  { %v1957_v14 = vld [vmem:[#allocation5 + $0x18] sm:$0xff]   ;;  %v1961_v18 = vld [vmem:[#allocation5 + $0x20] sm:$0xff]   ;;  %v1964_v21 = vld [vmem:[#allocation5 + $0xe8] sm:$0xff]  }
  0x61   :  { %1787 = vmatpush3.bf16.msra.mxu0 %v1949_v6  ;;  %v1958_v15 = vld [vmem:[#allocation5 + $0x98] sm:$0xff]   ;;  %v1962_v19 = vld [vmem:[#allocation5 + $0xa0] sm:$0xff]   ;;  %v1965_v22 = vld [vmem:[#allocation5 + $0x28] sm:$0xff]  }
  0x62   :  { %1809 = vmatpush3.bf16.msra.mxu1 %v1950_v7  ;;  %1788 = vmatprep.subr.bf16.mxu0 %v1951_v8  ;;  %v1966_v23 = vld [vmem:[#allocation5 + $0xa8] sm:$0xff]   ;;  %v1967_v24 = vld [vmem:[#allocation5 + $0x70] sm:$0xff]   ;;  %v1971_v28 = vld [vmem:[#allocation5 + $0x78] sm:$0xff]  }
  0x63   :  { %1810 = vmatprep.subr.bf16.mxu1 %v1952_v9  ;;  %v1968_v25 = vld [vmem:[#allocation5 + $0xf0] sm:$0xff]   ;;  %v1972_v29 = vld [vmem:[#allocation5 + $0xf8] sm:$0xff]   ;;  %v101_v32 = vld [vmem:[#allocation2 + $0x8] sm:$0xff] }
  0x64   :  { %v1969_v26 = vld [vmem:[#allocation5 + $0x30] sm:$0xff]   ;;  %v1973_v30 = vld [vmem:[#allocation5 + $0x38] sm:$0xff]   ;;  %v100_v34 = vld [vmem:[#allocation2] sm:$0xff]  ;;  %v109_v35 = vpack.c.bf16 %v101_v32, %v101_v32 }
  0x65   :  { %1789 = vmatpush3.bf16.msra.mxu0 %v1953_v10  ;;  %v1970_v27 = vld [vmem:[#allocation5 + $0xb0] sm:$0xff]   ;;  %v1974_v31 = vld [vmem:[#allocation5 + $0xb8] sm:$0xff]   ;;  %v108_v37 = vpack.c.bf16 %v100_v34, %v100_v34  ;;  %v1975_v40 = vld [vmem:[#allocation5 + $0x140] sm:$0xff]  }
  0x66   :  { %1811 = vmatpush3.bf16.msra.mxu1 %v1954_v11  ;;  %1790 = vmatprep.subr.bf16.mxu0 %v1955_v12  ;;  %v103_v33 = vld [vmem:[#allocation2 + $0x18] sm:$0xff]  ;;  %v102_v38 = vld [vmem:[#allocation2 + $0x10] sm:$0xff]  ;;  %v1976_v41 = vld [vmem:[#allocation5 + $0x1c0] sm:$0xff]  }
  0x67   :  { %1812 = vmatprep.subr.bf16.mxu1 %v1956_v13  ;;  %v111_v36 = vpack.c.bf16 %v103_v33, %v103_v33  ;;  %v110_v39 = vpack.c.bf16 %v102_v38, %v102_v38  ;;  %667 = vmatprep.mubr.bf16.mxu0 %v109_v35  ;;  %v1977_v42 = vld [vmem:[#allocation5 + $0x100] sm:$0xff]   ;;  %v1979_v44 = vld [vmem:[#allocation5 + $0x148] sm:$0xff]   ;;  %v1983_v48 = vld [vmem:[#allocation5 + $0x150] sm:$0xff]  }
  0x68   :  { %v1978_v43 = vld [vmem:[#allocation5 + $0x180] sm:$0xff]   ;;  %v1980_v45 = vld [vmem:[#allocation5 + $0x1c8] sm:$0xff]   ;;  %v1984_v49 = vld [vmem:[#allocation5 + $0x1d0] sm:$0xff]  }
  0x69   :  { %1791 = vmatpush3.bf16.msra.mxu0 %v1957_v14  ;;  %707 = vmatprep.mubr.bf16.mxu1 %v111_v36  ;;  %v1981_v46 = vld [vmem:[#allocation5 + $0x108] sm:$0xff]   ;;  %v1985_v50 = vld [vmem:[#allocation5 + $0x110] sm:$0xff]   ;;  %v1987_v52 = vld [vmem:[#allocation5 + $0x158] sm:$0xff]  }
  0x6a   :  { %1813 = vmatpush3.bf16.msra.mxu1 %v1958_v15  ;;  %1792 = vmatprep.subr.bf16.mxu0 %v1959_v16  ;;  %v1982_v47 = vld [vmem:[#allocation5 + $0x188] sm:$0xff]   ;;  %v1986_v51 = vld [vmem:[#allocation5 + $0x190] sm:$0xff]   ;;  %v1988_v53 = vld [vmem:[#allocation5 + $0x1d8] sm:$0xff]  }
  0x6b   :  { %1814 = vmatprep.subr.bf16.mxu1 %v1960_v17  ;;  %v1989_v54 = vld [vmem:[#allocation5 + $0x118] sm:$0xff]   ;;  %v1991_v56 = vld [vmem:[#allocation5 + $0x160] sm:$0xff]   ;;  %v1995_v60 = vld [vmem:[#allocation5 + $0x168] sm:$0xff]   ;;  %v2172_v17 = vmov 0.0  }
  0x6c   :  { %v1990_v55 = vld [vmem:[#allocation5 + $0x198] sm:$0xff]   ;;  %v1992_v57 = vld [vmem:[#allocation5 + $0x1e0] sm:$0xff]   ;;  %v1996_v61 = vld [vmem:[#allocation5 + $0x1e8] sm:$0xff]  }
  0x6d   :  { %1793 = vmatpush3.bf16.msra.mxu0 %v1961_v18  ;;  %v1993_v58 = vld [vmem:[#allocation5 + $0x120] sm:$0xff]   ;;  %v1997_v62 = vld [vmem:[#allocation5 + $0x128] sm:$0xff]   ;;  %v1999_v0 = vld [vmem:[#allocation5 + $0x170] sm:$0xff]  }
  0x6e   :  { %1815 = vmatpush3.bf16.msra.mxu1 %v1962_v19  ;;  %1794 = vmatprep.subr.bf16.mxu0 %v1963_v20  ;;  %v1994_v59 = vld [vmem:[#allocation5 + $0x1a0] sm:$0xff]   ;;  %v1998_v63 = vld [vmem:[#allocation5 + $0x1a8] sm:$0xff]   ;;  %v2000_v1 = vld [vmem:[#allocation5 + $0x1f0] sm:$0xff]  }
  0x6f   :  { %1816 = vmatprep.subr.bf16.mxu1 %v1964_v21  ;;  %v2001_v2 = vld [vmem:[#allocation5 + $0x130] sm:$0xff]   ;;  %v2003_v4 = vld [vmem:[#allocation5 + $0x178] sm:$0xff]   ;;  %v105_v8 = vld [vmem:[#allocation2 + $0x28] sm:$0xff] }
  0x70   :  { %v2002_v3 = vld [vmem:[#allocation5 + $0x1b0] sm:$0xff]   ;;  %v2004_v5 = vld [vmem:[#allocation5 + $0x1f8] sm:$0xff]   ;;  %v113_v10 = vpack.c.bf16 %v105_v8, %v105_v8  ;;  %v104_v12 = vld [vmem:[#allocation2 + $0x20] sm:$0xff] }
  0x71   :  { %1795 = vmatpush3.bf16.msra.mxu0 %v1965_v22  ;;  %v2005_v6 = vld [vmem:[#allocation5 + $0x138] sm:$0xff]   ;;  %v106_v13 = vld [vmem:[#allocation2 + $0x30] sm:$0xff]  ;;  %v112_v14 = vpack.c.bf16 %v104_v12, %v104_v12  ;;  %v2007_v16 = vld [vmem:[#allocation7] sm:$0xff]  }
  0x72   :  { %1817 = vmatpush3.bf16.msra.mxu1 %v1966_v23  ;;  %1796 = vmatprep.subr.bf16.mxu0 %v1967_v24  ;;  %v2006_v7 = vld [vmem:[#allocation5 + $0x1b8] sm:$0xff]   ;;  %v114_v15 = vpack.c.bf16 %v106_v13, %v106_v13  ;;  %v2008_v18 = vld [vmem:[#allocation7 + $0x8] sm:$0xff]   ;;  %v2009_v19 = vld [vmem:[#allocation7 + $0x10] sm:$0xff]  }
  0x73   :  { %1818 = vmatprep.subr.bf16.mxu1 %v1968_v25  ;;  %v107_v9 = vld [vmem:[#allocation2 + $0x38] sm:$0xff]  ;;  %v2011_v21 = vld [vmem:[#allocation7 + $0x20] sm:$0xff]   ;;  %v2012_v22 = vld [vmem:[#allocation7 + $0x28] sm:$0xff]  }
  0x74   :  { %v115_v11 = vpack.c.bf16 %v107_v9, %v107_v9  ;;  %v2010_v20 = vld [vmem:[#allocation7 + $0x18] sm:$0xff]   ;;  %v2013_v23 = vld [vmem:[#allocation7 + $0x30] sm:$0xff]   ;;  %v2015_v25 = vld [vmem:[#allocation8] sm:$0xff]  }
  0x75   :  { %1797 = vmatpush3.bf16.msra.mxu0 %v1969_v26  ;;  %v2014_v24 = vld [vmem:[#allocation7 + $0x38] sm:$0xff]   ;;  %v2016_v26 = vld [vmem:[#allocation8 + $0x8] sm:$0xff]   ;;  %v1637_v34 = vld [vmem:[%s2327_s2] ss:$0 sm:$0xff] }
  0x76   :  { %1819 = vmatpush3.bf16.msra.mxu1 %v1970_v27  ;;  %1798 = vmatprep.subr.bf16.mxu0 %v1971_v28  ;;  %v2017_v27 = vld [vmem:[#allocation8 + $0x10] sm:$0xff]   ;;  %v2018_v28 = vld [vmem:[#allocation8 + $0x18] sm:$0xff]   ;;  %v1038_v8 = vld [vmem:[#allocation10 + $0x80] sm:$0xff] }
  0x77   :  { %1820 = vmatprep.subr.bf16.mxu1 %v1972_v29  ;;  %v2019_v29 = vld [vmem:[#allocation8 + $0x20] sm:$0xff]  }
  0x78   :  { %v1042_v9 = vld [vmem:[#allocation10 + $0xa0] sm:$0xff] }
  0x79   :  { %1799 = vmatpush3.bf16.msra.mxu0 %v1973_v30  ;;  %v2020_v30 = vld [vmem:[#allocation8 + $0x28] sm:$0xff]   ;;  %v1046_v12 = vld [vmem:[#allocation10 + $0xc0] sm:$0xff] }
  0x7a   :  { %1821 = vmatpush3.bf16.msra.mxu1 %v1974_v31  ;;  %1828 = vmatprep.subr.bf16.mxu0 %v1975_v40  ;;  %v2021_v31 = vld [vmem:[#allocation8 + $0x30] sm:$0xff]   ;;  %v1050_v13 = vld [vmem:[#allocation10 + $0xe0] sm:$0xff] }
  0x7b   :  { %1850 = vmatprep.subr.bf16.mxu1 %v1976_v41 }
  0x7c   :  { %668 = vmatmul.mubr.bf16.vlgmr.msra.gmra.mrb[0].mxu0 %v108_v37 }
  0x7d   :  { %708 = vmatmul.mubr.bf16.vlgmr.msra.gmra.mrb[0].mxu1 %v110_v39  ;;  %1829 = vmatpush3.bf16.msra.mxu0 %v1977_v42 }
  0x7e   :  { %1851 = vmatpush3.bf16.msra.mxu1 %v1978_v43  ;;  %1830 = vmatprep.subr.bf16.mxu0 %v1979_v44 }
  0x7f   :  { %1852 = vmatprep.subr.bf16.mxu1 %v1980_v45  ;;  %747 = vmatprep.mubr.bf16.mxu0 %v113_v10  ;;  %v1737_v10 = vcombine.high %v1038_v8, %v1042_v9 }
  0x80   :  { %787 = vmatprep.mubr.bf16.mxu1 %v115_v11  ;;  %v1736_v11 = vcombine.low %v1038_v8, %v1042_v9  ;;  %v1029_v8 = vld [vmem:[#allocation10 + $0x38] sm:$0xff]  ;;  %v2174_v9 = vmov 0  }
  0x81   :  { %1831 = vmatpush3.bf16.msra.mxu0 %v1981_v46 }
  0x82   :  { %1853 = vmatpush3.bf16.msra.mxu1 %v1982_v47  ;;  %1832 = vmatprep.subr.bf16.mxu0 %v1983_v48 }
  0x83   :  { %1854 = vmatprep.subr.bf16.mxu1 %v1984_v49 }
  0x85   :  { %1833 = vmatpush3.bf16.msra.mxu0 %v1985_v50 }
  0x86   :  { %1855 = vmatpush3.bf16.msra.mxu1 %v1986_v51  ;;  %1834 = vmatprep.subr.bf16.mxu0 %v1987_v52 }
  0x87   :  { %1856 = vmatprep.subr.bf16.mxu1 %v1988_v53 }
  0x89   :  { %1835 = vmatpush3.bf16.msra.mxu0 %v1989_v54 }
  0x8a   :  { %1857 = vmatpush3.bf16.msra.mxu1 %v1990_v55  ;;  %1836 = vmatprep.subr.bf16.mxu0 %v1991_v56 }
  0x8b   :  { %1858 = vmatprep.subr.bf16.mxu1 %v1992_v57 }
  0x8d   :  { %1837 = vmatpush3.bf16.msra.mxu0 %v1993_v58 }
  0x8e   :  { %1859 = vmatpush3.bf16.msra.mxu1 %v1994_v59  ;;  %1838 = vmatprep.subr.bf16.mxu0 %v1995_v60  ;;  %v2022_v59 = vld [vmem:[#allocation8 + $0x38] sm:$0xff]   ;;  %v1022_v60 = vld [vmem:[#allocation10] sm:$0xff] }
  0x8f   :  { %1860 = vmatprep.subr.bf16.mxu1 %v1996_v61  ;;  %v1026_v61 = vld [vmem:[#allocation10 + $0x20] sm:$0xff] }
  0x91   :  { %1839 = vmatpush3.bf16.msra.mxu0 %v1997_v62  ;;  %v1023_v62 = vld [vmem:[#allocation10 + $0x8] sm:$0xff] }
  0x92   :  { %1861 = vmatpush3.bf16.msra.mxu1 %v1998_v63  ;;  %1840 = vmatprep.subr.bf16.mxu0 %v1999_v0  ;;  %v1720_v63 = vcombine.low %v1022_v60, %v1026_v61  ;;  %v1721_v0 = vcombine.high %v1022_v60, %v1026_v61  ;;  %v1082_v60 = vld [vmem:[#allocation10 + $0x1e0] sm:$0xff]  ;;  %v1079_v61 = vld [vmem:[#allocation10 + $0x1c8] sm:$0xff] }
  0x93   :  { %1862 = vmatprep.subr.bf16.mxu1 %v2000_v1  ;;  %v1027_v1 = vld [vmem:[#allocation10 + $0x28] sm:$0xff] }
  0x95   :  { %1841 = vmatpush3.bf16.msra.mxu0 %v2001_v2  ;;  %v1030_v2 = vld [vmem:[#allocation10 + $0x40] sm:$0xff] }
  0x96   :  { %1863 = vmatpush3.bf16.msra.mxu1 %v2002_v3  ;;  %1842 = vmatprep.subr.bf16.mxu0 %v2003_v4  ;;  %v1034_v3 = vld [vmem:[#allocation10 + $0x60] sm:$0xff]  ;;  %v1722_v4 = vcombine.low %v1023_v62, %v1027_v1 }
  0x97   :  { %1864 = vmatprep.subr.bf16.mxu1 %v2004_v5  ;;  %v1723_v5 = vcombine.high %v1023_v62, %v1027_v1 }
  0x99   :  { %1843 = vmatpush3.bf16.msra.mxu0 %v2005_v6  ;;  %v1729_v6 = vcombine.high %v1030_v2, %v1034_v3 }
  0x9a   :  { %1865 = vmatpush3.bf16.msra.mxu1 %v2006_v7  ;;  %1890 = vmatprep.subr.bf16.mxu0 %v2172_v17  ;;  %v1728_v7 = vcombine.low %v1030_v2, %v1034_v3  ;;  %v1024_v3 = vld [vmem:[#allocation10 + $0x10] sm:$0xff] }
  0x9b   :  { %1910 = vmatprep.subr.bf16.mxu1 %v2172_v17 }
  0x9c   :  { %748 = vmatmul.mubr.bf16.vlgmr.msra.gmra.mrb[4].mxu0 %v112_v14  ;;  %v1745_v14 = vcombine.high %v1046_v12, %v1050_v13 }
  0x9d   :  { %788 = vmatmul.mubr.bf16.vlgmr.msra.gmra.mrb[4].mxu1 %v114_v15  ;;  %1891 = vmatpush3.bf16.msra.mxu0 %v2007_v16  ;;  %v1744_v15 = vcombine.low %v1046_v12, %v1050_v13  ;;  %v1054_v16 = vld [vmem:[#allocation10 + $0x100] sm:$0xff] }
  0x9e   :  { %1892 = vmatprep.subr.bf16.mxu0 %v2172_v17  ;;  %1906 = vmatprep.mubr.msk.bf16.mxu0 %vm2173_vm0, %v2172_v17  ;;  %v1711_v12 = vld [vmem:[%s2331_s6] ss:$0 sm:$0xff] }
  0x9f   :  { %1926 = vmatprep.mubr.msk.bf16.mxu1 %vm2173_vm0, %v2172_v17  ;;  %1911 = vmatpush3.bf16.msra.mxu1 %v2015_v25  ;;  %v1074_v25 = vld [vmem:[#allocation10 + $0x1a0] sm:$0xff] }
  0xa0   :  { %1912 = vmatprep.subr.bf16.mxu1 %v2172_v17 }
  0xa1   :  { %1893 = vmatpush3.bf16.msra.mxu0 %v2008_v18 }
  0xa2   :  { %1894 = vmatprep.subr.bf16.mxu0 %v2172_v17 }
  0xa3   :  { %1913 = vmatpush3.bf16.msra.mxu1 %v2016_v26 }
  0xa4   :  { %1914 = vmatprep.subr.bf16.mxu1 %v2172_v17 }
  0xa5   :  { %1895 = vmatpush3.bf16.msra.mxu0 %v2009_v19 }
  0xa6   :  { %1896 = vmatprep.subr.bf16.mxu0 %v2172_v17 }
  0xa7   :  { %1915 = vmatpush3.bf16.msra.mxu1 %v2017_v27 }
  0xa8   :  { %1916 = vmatprep.subr.bf16.mxu1 %v2172_v17 }
  0xa9   :  { %1897 = vmatpush3.bf16.msra.mxu0 %v2010_v20  ;;  %v1062_v20 = vld [vmem:[#allocation10 + $0x140] sm:$0xff] }
  0xaa   :  { %1898 = vmatprep.subr.bf16.mxu0 %v2172_v17 }
  0xab   :  { %1917 = vmatpush3.bf16.msra.mxu1 %v2018_v28  ;;  %v1702_v28 = vld [vmem:[%s2329_s4] ss:$0 sm:$0xff] }
  0xac   :  { %1918 = vmatprep.subr.bf16.mxu1 %v2172_v17 }
  0xad   :  { %1899 = vmatpush3.bf16.msra.mxu0 %v2011_v21  ;;  %v1066_v21 = vld [vmem:[#allocation10 + $0x160] sm:$0xff] }
  0xae   :  { %1900 = vmatprep.subr.bf16.mxu0 %v2172_v17 }
  0xaf   :  { %1919 = vmatpush3.bf16.msra.mxu1 %v2019_v29 }
  0xb0   :  { %1920 = vmatprep.subr.bf16.mxu1 %v2172_v17 }
  0xb1   :  { %1901 = vmatpush3.bf16.msra.mxu0 %v2012_v22  ;;  %v1761_v22 = vcombine.high %v1062_v20, %v1066_v21 }
  0xb2   :  { %1902 = vmatprep.subr.bf16.mxu0 %v2172_v17 }
  0xb3   :  { %1921 = vmatpush3.bf16.msra.mxu1 %v2020_v30  ;;  %v1031_v30 = vld [vmem:[#allocation10 + $0x48] sm:$0xff] }
  0xb4   :  { %1922 = vmatprep.subr.bf16.mxu1 %v2172_v17 }
  0xb5   :  { %1903 = vmatpush3.bf16.msra.mxu0 %v2013_v23  ;;  %v1760_v23 = vcombine.low %v1062_v20, %v1066_v21  ;;  %v1037_v20 = vld [vmem:[#allocation10 + $0x78] sm:$0xff] }
  0xb6   :  { %1904 = vmatprep.subr.bf16.mxu0 %v2172_v17 }
  0xb7   :  { %1923 = vmatpush3.bf16.msra.mxu1 %v2021_v31  ;;  %v1035_v31 = vld [vmem:[#allocation10 + $0x68] sm:$0xff] }
  0xb8   :  { %1924 = vmatprep.subr.bf16.mxu1 %v2172_v17  ;;  %v1058_v17 = vld [vmem:[#allocation10 + $0x120] sm:$0xff] }
  0xb9   :  { %1905 = vmatpush3.bf16.msra.mxu0 %v2014_v24  ;;  %v1753_v18 = vcombine.high %v1054_v16, %v1058_v17  ;;  %v1752_v19 = vcombine.low %v1054_v16, %v1058_v17  ;;  %v1070_v24 = vld [vmem:[#allocation10 + $0x180] sm:$0xff]  ;;  %v1032_v16 = vld [vmem:[#allocation10 + $0x50] sm:$0xff] }
  0xba   :  { %1448 = vmatprep.subr.bf16.mxu0 %v1721_v0  ;;  %v1769_v26 = vcombine.high %v1070_v24, %v1074_v25  ;;  %v1768_v27 = vcombine.low %v1070_v24, %v1074_v25 }
  0xbb   :  { %1925 = vmatpush3.bf16.msra.mxu1 %v2022_v59  ;;  %v1078_v59 = vld [vmem:[#allocation10 + $0x1c0] sm:$0xff] }
  0xbc   :  { %1489 = vmatprep.subr.bf16.mxu1 %v1723_v5  ;;  %v1777_v62 = vcombine.high %v1078_v59, %v1082_v60  ;;  %v1776_v0 = vcombine.low %v1078_v59, %v1082_v60  ;;  %v1025_v5 = vld [vmem:[#allocation10 + $0x18] sm:$0xff]  ;;  %v1076_v59 = vld [vmem:[#allocation10 + $0x1b0] sm:$0xff] }
  0xbd   :  { %v1073_v60 = vld [vmem:[#allocation10 + $0x198] sm:$0xff] }
 0x14f   :  { %v1800_v32 = vpop.f32.mrb[0].mxu0 }
 0x150   :  { %v1822_v33 = vpop.f32.mrb[0].mxu1  ;;  %v1801_v35 = vpop.f32.mrb[1].mxu0 }
 0x151   :  { %v1823_v36 = vpop.f32.mrb[1].mxu1  ;;  %v1802_v37 = vadd.f32 %v1801_v35, %v1800_v32  ;;  %v1803_v39 = vpop.f32.mrb[2].mxu0 }
 0x152   :  { %v1824_v38 = vadd.f32 %v1823_v36, %v1822_v33  ;;  %v1825_v40 = vpop.f32.mrb[2].mxu1  ;;  %v1804_v41 = vpop.f32.mrb[3].mxu0  ;;  %v1043_v39 = vld [vmem:[#allocation10 + $0xa8] sm:$0xff] }
 0x153   :  { %v1826_v42 = vpop.f32.mrb[3].mxu1  ;;  %v670_v43 = vadd.f32 %v1802_v37, %v1637_v34  ;;  %v1731_v37 = vcombine.high %v1031_v30, %v1035_v31  ;;  %v1730_v40 = vcombine.low %v1031_v30, %v1035_v31 }
 0x154   :  { %v1047_v42 = vld [vmem:[#allocation10 + $0xc8] sm:$0xff] }
 0x155   :  { %v710_v44 = vadd.f32 %v1824_v38, %v670_v43  ;;  %v1039_v38 = vld [vmem:[#allocation10 + $0x88] sm:$0xff] }
 0x156   :  { %v1739_v41 = vcombine.high %v1039_v38, %v1043_v39  ;;  %v1051_v43 = vld [vmem:[#allocation10 + $0xe8] sm:$0xff] }
 0x16f   :  { %v1844_v45 = vpop.f32.mrb[4].mxu0 }
 0x170   :  { %v1866_v46 = vpop.f32.mrb[4].mxu1  ;;  %v1845_v47 = vpop.f32.mrb[5].mxu0 }
 0x171   :  { %v1846_v48 = vadd.f32 %v1845_v47, %v1844_v45  ;;  %v1867_v49 = vpop.f32.mrb[5].mxu1  ;;  %v1847_v50 = vpop.f32.mrb[6].mxu0  ;;  %v1747_v45 = vcombine.high %v1047_v42, %v1051_v43  ;;  %v1059_v47 = vld [vmem:[#allocation10 + $0x128] sm:$0xff] }
 0x172   :  { %v1868_v51 = vadd.f32 %v1867_v49, %v1866_v46  ;;  %v1869_v52 = vpop.f32.mrb[6].mxu1  ;;  %v1848_v53 = vpop.f32.mrb[7].mxu0  ;;  %v1055_v46 = vld [vmem:[#allocation10 + $0x108] sm:$0xff] }
 0x173   :  { %v750_v54 = vadd.f32 %v1846_v48, %v710_v44  ;;  %v1870_v55 = vpop.f32.mrb[7].mxu1  ;;  %v1738_v44 = vcombine.low %v1039_v38, %v1043_v39  ;;  %v1746_v48 = vcombine.low %v1047_v42, %v1051_v43  ;;  %v1755_v49 = vcombine.high %v1055_v46, %v1059_v47  ;;  %v1063_v50 = vld [vmem:[#allocation10 + $0x148] sm:$0xff]  ;;  %v1056_v42 = vld [vmem:[#allocation10 + $0x110] sm:$0xff] }
 0x174   :  { %v1754_v52 = vcombine.low %v1055_v46, %v1059_v47  ;;  %v1075_v55 = vld [vmem:[#allocation10 + $0x1a8] sm:$0xff]  ;;  %v1060_v43 = vld [vmem:[#allocation10 + $0x130] sm:$0xff] }
 0x175   :  { %v790_v56 = vadd.f32 %v1868_v51, %v750_v54  ;;  %v1067_v51 = vld [vmem:[#allocation10 + $0x168] sm:$0xff] }
 0x176   :  { %v1763_v53 = vcombine.high %v1063_v50, %v1067_v51  ;;  %v1071_v54 = vld [vmem:[#allocation10 + $0x188] sm:$0xff] }
 0x177   :  { %v795_v57 = vmax.f32 %v790_v56, 0.0  ;;  %v1762_v56 = vcombine.low %v1063_v50, %v1067_v51  ;;  %v1064_v50 = vld [vmem:[#allocation10 + $0x150] sm:$0xff] }
 0x178   :  { %v1068_v51 = vld [vmem:[#allocation10 + $0x170] sm:$0xff] }
 0x179   :  { %v796_v58 = vpack.c.bf16 %v795_v57, %v795_v57  ;;  %v1771_v57 = vcombine.high %v1071_v54, %v1075_v55 }
 0x17b   :  { %1907 = vmatmul.mubr.bf16.vlgmr.msra.gmra.mrb[8].mxu0 %v796_v58  ;;  %v1770_v58 = vcombine.low %v1071_v54, %v1075_v55  ;;  %v1756_v54 = vcombine.low %v1056_v42, %v1060_v43 }
 0x17c   :  { %1449 = vmatpush1.bf16.msra.mxu0 %v1720_v63  ;;  %v1083_v63 = vld [vmem:[#allocation10 + $0x1e8] sm:$0xff]  ;;  %1480 = vmatprep.mubr.bf16.mxu0 %v2174_v9 }
 0x17d   :  { %1450 = vmatprep.subr.bf16.mxu0 %v1729_v6  ;;  %v1778_v1 = vcombine.low %v1079_v61, %v1083_v63  ;;  %v1779_v2 = vcombine.high %v1079_v61, %v1083_v63  ;;  %v1077_v61 = vld [vmem:[#allocation10 + $0x1b8] sm:$0xff] }
 0x180   :  { %1451 = vmatpush1.bf16.msra.mxu0 %v1728_v7 }
 0x181   :  { %1452 = vmatprep.subr.bf16.mxu0 %v1737_v10  ;;  %v1726_v10 = vcombine.low %v1025_v5, %v1029_v8 }
 0x184   :  { %1453 = vmatpush1.bf16.msra.mxu0 %v1736_v11  ;;  %v1727_v11 = vcombine.high %v1025_v5, %v1029_v8  ;;  %v1085_v5 = vld [vmem:[#allocation10 + $0x1f8] sm:$0xff] }
 0x185   :  { %1454 = vmatprep.subr.bf16.mxu0 %v1745_v14 }
 0x188   :  { %1455 = vmatpush1.bf16.msra.mxu0 %v1744_v15 }
 0x189   :  { %1456 = vmatprep.subr.bf16.mxu0 %v1753_v18  ;;  %v1036_v18 = vld [vmem:[#allocation10 + $0x70] sm:$0xff] }
 0x18a   :  { %v1733_v24 = vcombine.high %v1032_v16, %v1036_v18  ;;  %v1732_v30 = vcombine.low %v1032_v16, %v1036_v18  ;;  %v1086_v16 = vld [vmem:[%s2333_s8] sm:$0xff]  ;;  %s2175_s8 = smov [#allocation11]  }
 0x18b   :  { %s1626_s12 = sshll.u32 %s2175_s8, 4  ;;  %s1627_s12 = int_to_ptr.vmem [resolvable:$true] %s1626_s12 }
 0x18c   :  { %1457 = vmatpush1.bf16.msra.mxu0 %v1752_v19  ;;  %v1033_v19 = vld [vmem:[#allocation10 + $0x58] sm:$0xff]  ;;  %s2133_s13 = scalar_lea.vmem %s1627_s12, 1024  ;;  %p2138_p13 = scmp.lt.s32.totalorder %s1627_s12, %s1627_s12 }
 0x18d   :  { %1458 = vmatprep.subr.bf16.mxu0 %v1761_v22  ;;  %v1735_v25 = vcombine.high %v1033_v19, %v1037_v20  ;;  %v1734_v31 = vcombine.low %v1033_v19, %v1037_v20  ;;  %p2134_p12 = scmp.ne.s32.totalorder %s1627_s12, %s2133_s13  ;;  %p2139_p0 = scmp.lt.s32.totalorder %s2133_s13, %s2133_s13 }
 0x18f   :  { %p2140_p1 = por %p2139_p0, %p2138_p13 }
 0x190   :  { %1459 = vmatpush1.bf16.msra.mxu0 %v1760_v23 }
 0x191   :  { %1460 = vmatprep.subr.bf16.mxu0 %v1769_v26  ;;  %v1040_v26 = vld [vmem:[#allocation10 + $0x90] sm:$0xff]  ;;  %p2141_p2 = pnand %p2140_p1, %p2134_p12 }
 0x194   :  { %1461 = vmatpush1.bf16.msra.mxu0 %v1768_v27  ;;  %v1044_v27 = vld [vmem:[#allocation10 + $0xb0] sm:$0xff] }
 0x195   :  { %1462 = vmatprep.subr.bf16.mxu0 %v1777_v62  ;;  %v1740_v38 = vcombine.low %v1040_v26, %v1044_v27  ;;  %v1764_v62 = vcombine.low %v1064_v50, %v1068_v51 }
 0x198   :  { %1463 = vmatpush1.bf16.msra.mxu0 %v1776_v0 }
 0x24e   :  { %v902_v29 = vpop.f32.mrb[8].mxu0 }
 0x24f   :  { %v903_v32 = vadd.f32 %v1702_v28, %v902_v29  ;;  %v1908_v33 = vpop.f32.mrb[9].mxu0  ;;  %v1041_v28 = vld [vmem:[#allocation10 + $0x98] sm:$0xff] }
 0x250   :  { %v905_v34 = vpop.f32.mrb[10].mxu0  ;;  %v1045_v29 = vld [vmem:[#allocation10 + $0xb8] sm:$0xff] }
 0x251   :  { %v908_v35 = vpack.c.bf16 %v903_v32, %v903_v32  ;;  %v1909_v36 = vpop.f32.mrb[11].mxu0  ;;  %v1741_v32 = vcombine.high %v1040_v26, %v1044_v27  ;;  %v1743_v33 = vcombine.high %v1041_v28, %v1045_v29  ;;  %v1048_v34 = vld [vmem:[#allocation10 + $0xd0] sm:$0xff]  ;;  %v1742_v39 = vcombine.low %v1041_v28, %v1045_v29 }
 0x252   :  { %v1049_v36 = vld [vmem:[#allocation10 + $0xd8] sm:$0xff] }
 0x253   :  { %1927 = vmatmul.mubr.bf16.vlgmr.msra.gmra.mrb[8].mxu1 %v908_v35  ;;  %v1052_v35 = vld [vmem:[#allocation10 + $0xf0] sm:$0xff] }
 0x254   :  { %1490 = vmatpush1.bf16.msra.mxu1 %v1722_v4  ;;  %v1028_v4 = vld [vmem:[#allocation10 + $0x30] sm:$0xff]  ;;  %1521 = vmatprep.mubr.bf16.mxu1 %v2174_v9  ;;  %v1748_v46 = vcombine.low %v1048_v34, %v1052_v35 }
 0x255   :  { %1491 = vmatprep.subr.bf16.mxu1 %v1731_v37  ;;  %v1724_v6 = vcombine.low %v1024_v3, %v1028_v4  ;;  %v1725_v7 = vcombine.high %v1024_v3, %v1028_v4  ;;  %v1053_v37 = vld [vmem:[#allocation10 + $0xf8] sm:$0xff]  ;;  %v1084_v3 = vld [vmem:[#allocation10 + $0x1f0] sm:$0xff] }
 0x256   :  { %v1750_v47 = vcombine.low %v1049_v36, %v1053_v37  ;;  %v1081_v4 = vld [vmem:[#allocation10 + $0x1d8] sm:$0xff] }
 0x257   :  { %1530 = vmatprep.subr.bf16.mxu0 %v1725_v7  ;;  %v1774_v7 = vcombine.low %v1073_v60, %v1077_v61 }
 0x258   :  { %1492 = vmatpush1.bf16.msra.mxu1 %v1730_v40  ;;  %v1749_v40 = vcombine.high %v1048_v34, %v1052_v35 }
 0x259   :  { %1493 = vmatprep.subr.bf16.mxu1 %v1739_v41  ;;  %v1751_v41 = vcombine.high %v1049_v36, %v1053_v37 }
 0x25c   :  { %1494 = vmatpush1.bf16.msra.mxu1 %v1738_v44  ;;  %v1057_v44 = vld [vmem:[#allocation10 + $0x118] sm:$0xff] }
 0x25d   :  { %1495 = vmatprep.subr.bf16.mxu1 %v1747_v45  ;;  %v1061_v45 = vld [vmem:[#allocation10 + $0x138] sm:$0xff] }
 0x25e   :  { %v1758_v55 = vcombine.low %v1057_v44, %v1061_v45 }
 0x260   :  { %1496 = vmatpush1.bf16.msra.mxu1 %v1746_v48  ;;  %v1757_v48 = vcombine.high %v1056_v42, %v1060_v43 }
 0x261   :  { %1497 = vmatprep.subr.bf16.mxu1 %v1755_v49  ;;  %v1759_v49 = vcombine.high %v1057_v44, %v1061_v45 }
 0x264   :  { %1498 = vmatpush1.bf16.msra.mxu1 %v1754_v52  ;;  %v1065_v52 = vld [vmem:[#allocation10 + $0x158] sm:$0xff] }
 0x265   :  { %1499 = vmatprep.subr.bf16.mxu1 %v1763_v53  ;;  %v1069_v53 = vld [vmem:[#allocation10 + $0x178] sm:$0xff] }
 0x266   :  { %v1766_v63 = vcombine.low %v1065_v52, %v1069_v53 }
 0x268   :  { %1500 = vmatpush1.bf16.msra.mxu1 %v1762_v56  ;;  %v1765_v56 = vcombine.high %v1064_v50, %v1068_v51 }
 0x269   :  { %1501 = vmatprep.subr.bf16.mxu1 %v1771_v57  ;;  %v1767_v57 = vcombine.high %v1065_v52, %v1069_v53 }
 0x26c   :  { %1502 = vmatpush1.bf16.msra.mxu1 %v1770_v58  ;;  %v1072_v58 = vld [vmem:[#allocation10 + $0x190] sm:$0xff] }
 0x26d   :  { %1503 = vmatprep.subr.bf16.mxu1 %v1779_v2  ;;  %v1773_v0 = vcombine.high %v1072_v58, %v1076_v59  ;;  %v1080_v2 = vld [vmem:[#allocation10 + $0x1d0] sm:$0xff] }
 0x26e   :  { %v1781_v8 = vcombine.high %v1080_v2, %v1084_v3 }
 0x270   :  { %1504 = vmatpush1.bf16.msra.mxu1 %v1778_v1  ;;  %v1775_v1 = vcombine.high %v1073_v60, %v1077_v61 }
 0x271   :  { %1571 = vmatprep.subr.bf16.mxu1 %v1727_v11  ;;  %v1782_v11 = vcombine.low %v1081_v4, %v1085_v5 }
 0x326   :  { %v1014_v13 = vpop.f32.mrb[8].mxu1 }
 0x327   :  { %v1015_v14 = vadd.f32 %v1711_v12, %v1014_v13  ;;  %v1928_v15 = vpop.f32.mrb[9].mxu1  ;;  %v1088_v12 = vlaneseq }
 0x328   :  { %v1017_v17 = vpop.f32.mrb[10].mxu1 }
 0x329   :  { %v1020_v21 = vmax.f32 %v1015_v14, 0.0  ;;  %v1929_v22 = vpop.f32.mrb[11].mxu1  ;;  %v1089_v13 = vshrl.u32 %v1088_v12, 7 }
 0x32b   :  { %v2304_v23 = vpack.c.bf16 %v1020_v21, %v1020_v21  ;;  %v1090_v14 = vsub.s32 0, %v1089_v13  ;;  %v1098_v15 = vsub.s32 2, %v1089_v13  ;;  %v1094_v17 = vsub.s32 1, %v1089_v13 }
 0x32c   :  { %v1102_v18 = vsub.s32 3, %v1089_v13  ;;  %v1106_v35 = vsub.s32 4, %v1089_v13  ;;  %v1114_v36 = vsub.s32 6, %v1089_v13  ;;  %v1110_v37 = vsub.s32 5, %v1089_v13 }
 0x32d   :  { %1481 = vmatmul.mubr.bf16.vlgmr.msra.gmra.mrb[12].mxu0 %v2304_v23  ;;  %1522 = vmatmul.mubr.bf16.vlgmr.msra.gmra.mrb[12].mxu1 %v2304_v23  ;;  %v1091_v19 = vrot.slane %v1086_v16, %v1090_v14  ;;  %v1099_v20 = vrot.slane %v1086_v16, %v1098_v15  ;;  %v1095_v21 = vrot.slane %v1086_v16, %v1094_v17 }
 0x32e   :  { %1531 = vmatpush1.bf16.msra.mxu0 %v1724_v6  ;;  %1572 = vmatpush1.bf16.msra.mxu1 %v1726_v10  ;;  %v1772_v6 = vcombine.low %v1072_v58, %v1076_v59  ;;  %v1780_v10 = vcombine.low %v1080_v2, %v1084_v3  ;;  %v1103_v22 = vrot.slane %v1086_v16, %v1102_v18 }
 0x32f   :  { %1532 = vmatprep.subr.bf16.mxu0 %v1733_v24  ;;  %1573 = vmatprep.subr.bf16.mxu1 %v1735_v25 }
 0x330   :  { %1562 = vmatprep.mubr.bf16.mxu0 %v2174_v9  ;;  %1603 = vmatprep.mubr.bf16.mxu1 %v2174_v9  ;;  %v1783_v9 = vcombine.high %v1081_v4, %v1085_v5 }
 0x332   :  { %1533 = vmatpush1.bf16.msra.mxu0 %v1732_v30  ;;  %1574 = vmatpush1.bf16.msra.mxu1 %v1734_v31 }
 0x333   :  { %1534 = vmatprep.subr.bf16.mxu0 %v1741_v32  ;;  %1575 = vmatprep.subr.bf16.mxu1 %v1743_v33 }
 0x336   :  { %1535 = vmatpush1.bf16.msra.mxu0 %v1740_v38  ;;  %1576 = vmatpush1.bf16.msra.mxu1 %v1742_v39  ;;  %v1118_v38 = vsub.s32 7, %v1089_v13  ;;  %v1107_v39 = vrot.slane %v1086_v16, %v1106_v35 }
 0x337   :  { %1536 = vmatprep.subr.bf16.mxu0 %v1749_v40  ;;  %1577 = vmatprep.subr.bf16.mxu1 %v1751_v41  ;;  %v1115_v40 = vrot.slane %v1086_v16, %v1114_v36  ;;  %v1111_v41 = vrot.slane %v1086_v16, %v1110_v37 }
 0x338   :  { %v1119_v42 = vrot.slane %v1086_v16, %v1118_v38 }
 0x33a   :  { %1537 = vmatpush1.bf16.msra.mxu0 %v1748_v46  ;;  %1578 = vmatpush1.bf16.msra.mxu1 %v1750_v47 }
 0x33b   :  { %1538 = vmatprep.subr.bf16.mxu0 %v1757_v48  ;;  %1579 = vmatprep.subr.bf16.mxu1 %v1759_v49 }
 0x33e   :  { %1539 = vmatpush1.bf16.msra.mxu0 %v1756_v54  ;;  %1580 = vmatpush1.bf16.msra.mxu1 %v1758_v55 }
 0x33f   :  { %1540 = vmatprep.subr.bf16.mxu0 %v1765_v56  ;;  %1581 = vmatprep.subr.bf16.mxu1 %v1767_v57 }
 0x342   :  { %1541 = vmatpush1.bf16.msra.mxu0 %v1764_v62  ;;  %1582 = vmatpush1.bf16.msra.mxu1 %v1766_v63 }
 0x343   :  { %1542 = vmatprep.subr.bf16.mxu0 %v1773_v0  ;;  %1583 = vmatprep.subr.bf16.mxu1 %v1775_v1 }
 0x346   :  { %1543 = vmatpush1.bf16.msra.mxu0 %v1772_v6  ;;  %1584 = vmatpush1.bf16.msra.mxu1 %v1774_v7 }
 0x347   :  { %1544 = vmatprep.subr.bf16.mxu0 %v1781_v8  ;;  %1585 = vmatprep.subr.bf16.mxu1 %v1783_v9 }
 0x34a   :  { %1545 = vmatpush1.bf16.msra.mxu0 %v1780_v10  ;;  %1586 = vmatpush1.bf16.msra.mxu1 %v1782_v11 }
 0x34d   :  { %1563 = vmatmul.mubr.bf16.vlgmr.msra.gmra.mrb[16].mxu0 %v2304_v23  ;;  %1604 = vmatmul.mubr.bf16.vlgmr.msra.gmra.mrb[16].mxu1 %v2304_v23 }
 0x400   :  { %v1482_v24 = vpop.f32.mrb[12].mxu0  ;;  %v1523_v25 = vpop.f32.mrb[12].mxu1 }
 0x401   :  { %v1483_v26 = vadd.f32 %v1482_v24, %v1091_v19  ;;  %v1524_v27 = vadd.f32 %v1523_v25, %v1099_v20  ;;  %v1484_v28 = vpop.f32.mrb[13].mxu0  ;;  %v1525_v23 = vpop.f32.mrb[13].mxu1 }
 0x402   :  { %v1485_v29 = vadd.f32 %v1484_v28, %v1095_v21  ;;  %v1526_v30 = vadd.f32 %v1525_v23, %v1103_v22  ;;  %v1486_v31 = vpop.f32.mrb[14].mxu0  ;;  %v1527_v32 = vpop.f32.mrb[14].mxu1 }
 0x403   :  { %1612 = vst [vmem:[#allocation11] sm:$0xff] %v1483_v26  ;;  %1614 = vst [vmem:[#allocation11 + $0x10] sm:$0xff] %v1524_v27  ;;  %v1487_v33 = vpop.f32.mrb[15].mxu0  ;;  %v1528_v34 = vpop.f32.mrb[15].mxu1 }
 0x404   :  { %1613 = vst [vmem:[#allocation11 + $0x8] sm:$0xff] %v1485_v29  ;;  %1615 = vst [vmem:[#allocation11 + $0x18] sm:$0xff] %v1526_v30 }
 0x420   :  { %v1564_v43 = vpop.f32.mrb[16].mxu0  ;;  %v1605_v44 = vpop.f32.mrb[16].mxu1 }
 0x421   :  { %v1565_v45 = vadd.f32 %v1564_v43, %v1107_v39  ;;  %v1606_v46 = vadd.f32 %v1605_v44, %v1115_v40  ;;  %v1566_v47 = vpop.f32.mrb[17].mxu0  ;;  %v1607_v48 = vpop.f32.mrb[17].mxu1 }
 0x422   :  { %v1567_v49 = vadd.f32 %v1566_v47, %v1111_v41  ;;  %v1608_v50 = vadd.f32 %v1607_v48, %v1119_v42  ;;  %v1568_v51 = vpop.f32.mrb[18].mxu0  ;;  %v1609_v52 = vpop.f32.mrb[18].mxu1 }
 0x423   :  { %1616 = vst [vmem:[#allocation11 + $0x20] sm:$0xff] %v1565_v45  ;;  %1618 = vst [vmem:[#allocation11 + $0x30] sm:$0xff] %v1606_v46  ;;  %v1569_v53 = vpop.f32.mrb[19].mxu0  ;;  %v1610_v54 = vpop.f32.mrb[19].mxu1 }
 0x424   :  { %1617 = vst [vmem:[#allocation11 + $0x28] sm:$0xff] %v1567_v49  ;;  %1619 = vst [vmem:[#allocation11 + $0x38] sm:$0xff] %v1608_v50 }
 0x425   :  { %2144 = shalt.err (!%p2141_p2)
}
 0x426   :  { %s2145_s14 = scalar_lea.hbm %s2334_s9, 1024 }
 0x427   :  { %p2146_p3 = scmp.ne.s32.totalorder %s2334_s9, %s2145_s14  ;;  %p2149_p4 = scmp.lt.u32.totalorder %s2145_s14, %s2334_s9 }
 0x429   :  { %p2151_p5 = pnand %p2149_p4, %p2146_p3 }
 0x42b   :  { %2154 = shalt.err (!%p2151_p5)
}
 0x42c   :  { %1629 = dma.vmem_to_hbm [thread:$0]  %s1627_s12, 1024, %s2334_s9, [#allocation4]  }
 0x42d   :  { %2161 = dma.done.wait [#allocation4], 1024  }
 0x42e   :  { %2162 = vsyncadd [#allocation4], 4294966272 }
 0x42f   :  { %1633 = vsyncpa [#allocation3], 1 }
 0x430   :  { %1634 = vsyncpa [#allocation6], 1 }
 0x431   :  { %1635 = vsyncpa [#allocation9], 1 }
 0x432   :  { %1636 = vsyncpa [#allocation4], 1 }

// kernel: tpu_custom_call.1
= control target key start
LH: loop header
LB: loop body
LE: loop exit
PB: predicated region body
PF: predicated region fallthrough
CT: control target
= control target key end

     0   :  { %14 = vsyncpa [#allocation3], 0  ;;  %s2325_s0 = inlined_call_operand.hbm [shape: f32[8,1024], index: 0, kind: input, shape index: {}]   ;;  %s2326_s1 = inlined_call_operand.hbm [shape: bf16[1024,128], index: 1, kind: input, shape index: {}]   ;;  %s2327_s2 = inlined_call_operand.vmem [shape: f32[1,128], index: 2, kind: input, shape index: {}]   ;;  %s2328_s3 = inlined_call_operand.hbm [shape: bf16[128,128], index: 3, kind: input, shape index: {}]   ;;  %s2329_s4 = inlined_call_operand.vmem [shape: f32[1,128], index: 4, kind: input, shape index: {}]   ;;  %s2330_s5 = inlined_call_operand.hbm [shape: bf16[128,128], index: 5, kind: input, shape index: {}]   ;;  %s2331_s6 = inlined_call_operand.vmem [shape: f32[1,128], index: 6, kind: input, shape index: {}]   ;;  %s2332_s7 = inlined_call_operand.hbm [shape: bf16[128,1024], index: 7, kind: input, shape index: {}]   ;;  %s2333_s8 = inlined_call_operand.vmem [shape: f32[1,1024], index: 8, kind: input, shape index: {}]   ;;  %s2334_s9 = inlined_call_operand.hbm [shape: f32[8,1024], index: 9, kind: output, shape index: {}]  }
   0x1   :  { %15 = vsyncpa [#allocation6], 0 }
   0x2   :  { %16 = vsyncpa [#allocation9], 0 }
   0x3   :  { %17 = vsyncpa [#allocation4], 0  ;;  %s2163_s30 = smov [#allocation5]   ;;  %s2023_s13 = scalar_lea.hbm %s2326_s1, 8192 }
   0x4   :  { %s33_s10 = sshll.u32 %s2163_s30, 4  ;;  %p2024_p0 = scmp.ne.s32.totalorder %s2326_s1, %s2023_s13  ;;  %s34_s10 = int_to_ptr.vmem [resolvable:$true] %s33_s10 }
   0x5   :  { %p2027_p1 = scmp.lt.u32.totalorder %s2023_s13, %s2326_s1 }
   0x7   :  { %p2029_p2 = pnand %p2027_p1, %p2024_p0 }
   0x9   :  { %2032 = shalt.err (!%p2029_p2)
}
   0xa   :  { %s2033_s18 = scalar_lea.vmem %s34_s10, 8192  ;;  %p2038_p4 = scmp.lt.s32.totalorder %s34_s10, %s34_s10 }
   0xb   :  { %p2034_p3 = scmp.ne.s32.totalorder %s34_s10, %s2033_s18  ;;  %p2039_p5 = scmp.lt.s32.totalorder %s2033_s18, %s2033_s18 }
   0xd   :  { %p2040_p6 = por %p2039_p5, %p2038_p4 }
   0xf   :  { %p2041_p7 = pnand %p2040_p6, %p2034_p3 }
  0x11   :  { %2044 = shalt.err (!%p2041_p7)
}
  0x12   :  { %s2164_s19 = smov 64   ;;  %s2165_s20 = smov 4  }
  0x13   :  { %39 = dma.hbm_to_vmem [thread:$0]  %s2326_s1, 8192, %s34_s10, [#allocation6], %s2164_s19, %s2164_s19, %s2165_s20  }
  0x14   :  { %s2166_s23 = smov [#allocation8]   ;;  %s2167_s25 = smov [#allocation2]  }
  0x15   :  { %s61_s24 = sshll.u32 %s2166_s23, 4  ;;  %s24_s26 = sshll.u32 %s2167_s25, 4  ;;  %s62_s24 = int_to_ptr.vmem [resolvable:$true] %s61_s24  ;;  %s25_s26 = int_to_ptr.vmem [resolvable:$true] %s24_s26 }
  0x16   :  { %s2045_s29 = scalar_lea.hbm %s2330_s5, 1024 }
  0x17   :  { %p2046_p8 = scmp.ne.s32.totalorder %s2330_s5, %s2045_s29  ;;  %p2049_p9 = scmp.lt.u32.totalorder %s2045_s29, %s2330_s5 }
  0x19   :  { %p2051_p10 = pnand %p2049_p9, %p2046_p8 }
  0x1b   :  { %2054 = shalt.err (!%p2051_p10)
}
  0x1c   :  { %s2055_s1 = scalar_lea.vmem %s62_s24, 1024  ;;  %p2060_p12 = scmp.lt.s32.totalorder %s62_s24, %s62_s24 }
  0x1d   :  { %p2056_p11 = scmp.ne.s32.totalorder %s62_s24, %s2055_s1  ;;  %p2061_p13 = scmp.lt.s32.totalorder %s2055_s1, %s2055_s1 }
  0x1f   :  { %p2062_p0 = por %p2061_p13, %p2060_p12 }
  0x21   :  { %p2063_p1 = pnand %p2062_p0, %p2056_p11 }
  0x23   :  { %2066 = shalt.err (!%p2063_p1)
}
  0x24   :  { %67 = dma.hbm_to_vmem [thread:$0]  %s2330_s5, 1024, %s62_s24, [#allocation9], %s2164_s19, %s2164_s19, %s2165_s20  }
  0x25   :  { %s2067_s17 = scalar_lea.hbm %s2325_s0, 1024 }
  0x26   :  { %p2068_p2 = scmp.ne.s32.totalorder %s2325_s0, %s2067_s17  ;;  %p2071_p3 = scmp.lt.u32.totalorder %s2067_s17, %s2325_s0 }
  0x28   :  { %p2073_p4 = pnand %p2071_p3, %p2068_p2 }
  0x2a   :  { %2076 = shalt.err (!%p2073_p4)
}
  0x2b   :  { %s2077_s25 = scalar_lea.vmem %s25_s26, 1024  ;;  %p2082_p6 = scmp.lt.s32.totalorder %s25_s26, %s25_s26 }
  0x2c   :  { %p2078_p5 = scmp.ne.s32.totalorder %s25_s26, %s2077_s25  ;;  %p2083_p7 = scmp.lt.s32.totalorder %s2077_s25, %s2077_s25 }
  0x2e   :  { %p2084_p8 = por %p2083_p7, %p2082_p6 }
  0x30   :  { %p2085_p9 = pnand %p2084_p8, %p2078_p5 }
  0x32   :  { %2088 = shalt.err (!%p2085_p9)
}
  0x33   :  { %27 = dma.hbm_to_vmem [thread:$0]  %s2325_s0, 1024, %s25_s26, [#allocation3]  }
  0x34   :  { %s2168_s27 = smov [#allocation7]   ;;  %s2169_s29 = smov [#allocation10]  }
  0x35   :  { %s47_s28 = sshll.u32 %s2168_s27, 4  ;;  %s75_s30 = sshll.u32 %s2169_s29, 4  ;;  %s48_s28 = int_to_ptr.vmem [resolvable:$true] %s47_s28  ;;  %s76_s30 = int_to_ptr.vmem [resolvable:$true] %s75_s30 }
  0x36   :  { %s2089_s13 = scalar_lea.hbm %s2328_s3, 1024 }
  0x37   :  { %p2090_p10 = scmp.ne.s32.totalorder %s2328_s3, %s2089_s13  ;;  %p2093_p11 = scmp.lt.u32.totalorder %s2089_s13, %s2328_s3 }
  0x39   :  { %p2095_p12 = pnand %p2093_p11, %p2090_p10 }
  0x3b   :  { %2098 = shalt.err (!%p2095_p12)
}
  0x3c   :  { %s2099_s0 = scalar_lea.vmem %s48_s28, 1024  ;;  %p2104_p0 = scmp.lt.s32.totalorder %s48_s28, %s48_s28 }
  0x3d   :  { %p2100_p13 = scmp.ne.s32.totalorder %s48_s28, %s2099_s0  ;;  %p2105_p1 = scmp.lt.s32.totalorder %s2099_s0, %s2099_s0 }
  0x3f   :  { %p2106_p2 = por %p2105_p1, %p2104_p0 }
  0x41   :  { %p2107_p3 = pnand %p2106_p2, %p2100_p13 }
  0x43   :  { %2110 = shalt.err (!%p2107_p3)
}
  0x44   :  { %53 = dma.hbm_to_vmem [thread:$0]  %s2328_s3, 1024, %s48_s28, [#allocation6], %s2164_s19, %s2164_s19, %s2165_s20  }
  0x45   :  { %s2111_s21 = scalar_lea.hbm %s2332_s7, 8192 }
  0x46   :  { %p2112_p4 = scmp.ne.s32.totalorder %s2332_s7, %s2111_s21  ;;  %p2115_p5 = scmp.lt.u32.totalorder %s2111_s21, %s2332_s7 }
  0x48   :  { %p2117_p6 = pnand %p2115_p5, %p2112_p4 }
  0x4a   :  { %2120 = shalt.err (!%p2117_p6)
}
  0x4b   :  { %s2121_s24 = scalar_lea.vmem %s76_s30, 8192  ;;  %p2126_p8 = scmp.lt.s32.totalorder %s76_s30, %s76_s30 }
  0x4c   :  { %p2122_p7 = scmp.ne.s32.totalorder %s76_s30, %s2121_s24  ;;  %p2127_p9 = scmp.lt.s32.totalorder %s2121_s24, %s2121_s24 }
  0x4e   :  { %p2128_p10 = por %p2127_p9, %p2126_p8 }
  0x50   :  { %p2129_p11 = pnand %p2128_p10, %p2122_p7 }
  0x52   :  { %2132 = shalt.err (!%p2129_p11)
}
  0x53   :  { %s2170_s3 = smov 512   ;;  %s2171_s19 = smov 32  }
  0x54   :  { %81 = dma.hbm_to_vmem [thread:$0]  %s2332_s7, 8192, %s76_s30, [#allocation9], %s2170_s3, %s2170_s3, %s2171_s19  }
  0x55   :  { %2155 = dma.done.wait [#allocation3], 1024  }
  0x56   :  { %2156 = vsyncadd [#allocation3], 4294966272 }
  0x57   :  { %2157 = dma.done.wait [#allocation6], 9216  }
  0x58   :  { %2158 = vsyncadd [#allocation6], 4294958080 }
  0x59   :  { %2159 = dma.done.wait [#allocation9], 9216  }
  0x5a   :  { %2160 = vsyncadd [#allocation9], 4294958080  ;;  %v1943_v0 = vld [vmem:[#allocation5 + $0x40] sm:$0xff]   ;;  %v1947_v4 = vld [vmem:[#allocation5 + $0x48] sm:$0xff]   ;;  %vm2173_vm0 = vmmov 0  }
  0x5b   :  { %v1944_v1 = vld [vmem:[#allocation5 + $0xc0] sm:$0xff]   ;;  %1784 = vmatprep.subr.bf16.mxu0 %v1943_v0  ;;  %v1948_v5 = vld [vmem:[#allocation5 + $0xc8] sm:$0xff]   ;;  %v1951_v8 = vld [vmem:[#allocation5 + $0x50] sm:$0xff]  }
  0x5c   :  { %v1945_v2 = vld [vmem:[#allocation5] sm:$0xff]   ;;  %1806 = vmatprep.subr.bf16.mxu1 %v1944_v1  ;;  %v1949_v6 = vld [vmem:[#allocation5 + $0x8] sm:$0xff]   ;;  %v1952_v9 = vld [vmem:[#allocation5 + $0xd0] sm:$0xff]  }
  0x5d   :  { %v1946_v3 = vld [vmem:[#allocation5 + $0x80] sm:$0xff]   ;;  %1785 = vmatpush3.bf16.msra.mxu0 %v1945_v2  ;;  %v1950_v7 = vld [vmem:[#allocation5 + $0x88] sm:$0xff]   ;;  %v1953_v10 = vld [vmem:[#allocation5 + $0x10] sm:$0xff]  }
  0x5e   :  { %1807 = vmatpush3.bf16.msra.mxu1 %v1946_v3  ;;  %1786 = vmatprep.subr.bf16.mxu0 %v1947_v4  ;;  %v1954_v11 = vld [vmem:[#allocation5 + $0x90] sm:$0xff]   ;;  %v1955_v12 = vld [vmem:[#allocation5 + $0x58] sm:$0xff]   ;;  %v1959_v16 = vld [vmem:[#allocation5 + $0x60] sm:$0xff]  }
  0x5f   :  { %1808 = vmatprep.subr.bf16.mxu1 %v1948_v5  ;;  %v1956_v13 = vld [vmem:[#allocation5 + $0xd8] sm:$0xff]   ;;  %v1960_v17 = vld [vmem:[#allocation5 + $0xe0] sm:$0xff]   ;;  %v1963_v20 = vld [vmem:[#allocation5 + $0x68] sm:$0xff]  }
  0x60   :  { %v1957_v14 = vld [vmem:[#allocation5 + $0x18] sm:$0xff]   ;;  %v1961_v18 = vld [vmem:[#allocation5 + $0x20] sm:$0xff]   ;;  %v1964_v21 = vld [vmem:[#allocation5 + $0xe8] sm:$0xff]  }
  0x61   :  { %1787 = vmatpush3.bf16.msra.mxu0 %v1949_v6  ;;  %v1958_v15 = vld [vmem:[#allocation5 + $0x98] sm:$0xff]   ;;  %v1962_v19 = vld [vmem:[#allocation5 + $0xa0] sm:$0xff]   ;;  %v1965_v22 = vld [vmem:[#allocation5 + $0x28] sm:$0xff]  }
  0x62   :  { %1809 = vmatpush3.bf16.msra.mxu1 %v1950_v7  ;;  %1788 = vmatprep.subr.bf16.mxu0 %v1951_v8  ;;  %v1966_v23 = vld [vmem:[#allocation5 + $0xa8] sm:$0xff]   ;;  %v1967_v24 = vld [vmem:[#allocation5 + $0x70] sm:$0xff]   ;;  %v1971_v28 = vld [vmem:[#allocation5 + $0x78] sm:$0xff]  }
  0x63   :  { %1810 = vmatprep.subr.bf16.mxu1 %v1952_v9  ;;  %v1968_v25 = vld [vmem:[#allocation5 + $0xf0] sm:$0xff]   ;;  %v1972_v29 = vld [vmem:[#allocation5 + $0xf8] sm:$0xff]   ;;  %v101_v32 = vld [vmem:[#allocation2 + $0x8] sm:$0xff] }
  0x64   :  { %v1969_v26 = vld [vmem:[#allocation5 + $0x30] sm:$0xff]   ;;  %v1973_v30 = vld [vmem:[#allocation5 + $0x38] sm:$0xff]   ;;  %v100_v34 = vld [vmem:[#allocation2] sm:$0xff]  ;;  %v109_v35 = vpack.c.bf16 %v101_v32, %v101_v32 }
  0x65   :  { %1789 = vmatpush3.bf16.msra.mxu0 %v1953_v10  ;;  %v1970_v27 = vld [vmem:[#allocation5 + $0xb0] sm:$0xff]   ;;  %v1974_v31 = vld [vmem:[#allocation5 + $0xb8] sm:$0xff]   ;;  %v108_v37 = vpack.c.bf16 %v100_v34, %v100_v34  ;;  %v1975_v40 = vld [vmem:[#allocation5 + $0x140] sm:$0xff]  }
  0x66   :  { %1811 = vmatpush3.bf16.msra.mxu1 %v1954_v11  ;;  %1790 = vmatprep.subr.bf16.mxu0 %v1955_v12  ;;  %v103_v33 = vld [vmem:[#allocation2 + $0x18] sm:$0xff]  ;;  %v102_v38 = vld [vmem:[#allocation2 + $0x10] sm:$0xff]  ;;  %v1976_v41 = vld [vmem:[#allocation5 + $0x1c0] sm:$0xff]  }
  0x67   :  { %1812 = vmatprep.subr.bf16.mxu1 %v1956_v13  ;;  %v111_v36 = vpack.c.bf16 %v103_v33, %v103_v33  ;;  %v110_v39 = vpack.c.bf16 %v102_v38, %v102_v38  ;;  %667 = vmatprep.mubr.bf16.mxu0 %v109_v35  ;;  %v1977_v42 = vld [vmem:[#allocation5 + $0x100] sm:$0xff]   ;;  %v1979_v44 = vld [vmem:[#allocation5 + $0x148] sm:$0xff]   ;;  %v1983_v48 = vld [vmem:[#allocation5 + $0x150] sm:$0xff]  }
  0x68   :  { %v1978_v43 = vld [vmem:[#allocation5 + $0x180] sm:$0xff]   ;;  %v1980_v45 = vld [vmem:[#allocation5 + $0x1c8] sm:$0xff]   ;;  %v1984_v49 = vld [vmem:[#allocation5 + $0x1d0] sm:$0xff]  }
  0x69   :  { %1791 = vmatpush3.bf16.msra.mxu0 %v1957_v14  ;;  %707 = vmatprep.mubr.bf16.mxu1 %v111_v36  ;;  %v1981_v46 = vld [vmem:[#allocation5 + $0x108] sm:$0xff]   ;;  %v1985_v50 = vld [vmem:[#allocation5 + $0x110] sm:$0xff]   ;;  %v1987_v52 = vld [vmem:[#allocation5 + $0x158] sm:$0xff]  }
  0x6a   :  { %1813 = vmatpush3.bf16.msra.mxu1 %v1958_v15  ;;  %1792 = vmatprep.subr.bf16.mxu0 %v1959_v16  ;;  %v1982_v47 = vld [vmem:[#allocation5 + $0x188] sm:$0xff]   ;;  %v1986_v51 = vld [vmem:[#allocation5 + $0x190] sm:$0xff]   ;;  %v1988_v53 = vld [vmem:[#allocation5 + $0x1d8] sm:$0xff]  }
  0x6b   :  { %1814 = vmatprep.subr.bf16.mxu1 %v1960_v17  ;;  %v1989_v54 = vld [vmem:[#allocation5 + $0x118] sm:$0xff]   ;;  %v1991_v56 = vld [vmem:[#allocation5 + $0x160] sm:$0xff]   ;;  %v1995_v60 = vld [vmem:[#allocation5 + $0x168] sm:$0xff]   ;;  %v2172_v17 = vmov 0.0  }
  0x6c   :  { %v1990_v55 = vld [vmem:[#allocation5 + $0x198] sm:$0xff]   ;;  %v1992_v57 = vld [vmem:[#allocation5 + $0x1e0] sm:$0xff]   ;;  %v1996_v61 = vld [vmem:[#allocation5 + $0x1e8] sm:$0xff]  }
  0x6d   :  { %1793 = vmatpush3.bf16.msra.mxu0 %v1961_v18  ;;  %v1993_v58 = vld [vmem:[#allocation5 + $0x120] sm:$0xff]   ;;  %v1997_v62 = vld [vmem:[#allocation5 + $0x128] sm:$0xff]   ;;  %v1999_v0 = vld [vmem:[#allocation5 + $0x170] sm:$0xff]  }
  0x6e   :  { %1815 = vmatpush3.bf16.msra.mxu1 %v1962_v19  ;;  %1794 = vmatprep.subr.bf16.mxu0 %v1963_v20  ;;  %v1994_v59 = vld [vmem:[#allocation5 + $0x1a0] sm:$0xff]   ;;  %v1998_v63 = vld [vmem:[#allocation5 + $0x1a8] sm:$0xff]   ;;  %v2000_v1 = vld [vmem:[#allocation5 + $0x1f0] sm:$0xff]  }
  0x6f   :  { %1816 = vmatprep.subr.bf16.mxu1 %v1964_v21  ;;  %v2001_v2 = vld [vmem:[#allocation5 + $0x130] sm:$0xff]   ;;  %v2003_v4 = vld [vmem:[#allocation5 + $0x178] sm:$0xff]   ;;  %v105_v8 = vld [vmem:[#allocation2 + $0x28] sm:$0xff] }
  0x70   :  { %v2002_v3 = vld [vmem:[#allocation5 + $0x1b0] sm:$0xff]   ;;  %v2004_v5 = vld [vmem:[#allocation5 + $0x1f8] sm:$0xff]   ;;  %v113_v10 = vpack.c.bf16 %v105_v8, %v105_v8  ;;  %v104_v12 = vld [vmem:[#allocation2 + $0x20] sm:$0xff] }
  0x71   :  { %1795 = vmatpush3.bf16.msra.mxu0 %v1965_v22  ;;  %v2005_v6 = vld [vmem:[#allocation5 + $0x138] sm:$0xff]   ;;  %v106_v13 = vld [vmem:[#allocation2 + $0x30] sm:$0xff]  ;;  %v112_v14 = vpack.c.bf16 %v104_v12, %v104_v12  ;;  %v2007_v16 = vld [vmem:[#allocation7] sm:$0xff]  }
  0x72   :  { %1817 = vmatpush3.bf16.msra.mxu1 %v1966_v23  ;;  %1796 = vmatprep.subr.bf16.mxu0 %v1967_v24  ;;  %v2006_v7 = vld [vmem:[#allocation5 + $0x1b8] sm:$0xff]   ;;  %v114_v15 = vpack.c.bf16 %v106_v13, %v106_v13  ;;  %v2008_v18 = vld [vmem:[#allocation7 + $0x8] sm:$0xff]   ;;  %v2009_v19 = vld [vmem:[#allocation7 + $0x10] sm:$0xff]  }
  0x73   :  { %1818 = vmatprep.subr.bf16.mxu1 %v1968_v25  ;;  %v107_v9 = vld [vmem:[#allocation2 + $0x38] sm:$0xff]  ;;  %v2011_v21 = vld [vmem:[#allocation7 + $0x20] sm:$0xff]   ;;  %v2012_v22 = vld [vmem:[#allocation7 + $0x28] sm:$0xff]  }
  0x74   :  { %v115_v11 = vpack.c.bf16 %v107_v9, %v107_v9  ;;  %v2010_v20 = vld [vmem:[#allocation7 + $0x18] sm:$0xff]   ;;  %v2013_v23 = vld [vmem:[#allocation7 + $0x30] sm:$0xff]   ;;  %v2015_v25 = vld [vmem:[#allocation8] sm:$0xff]  }
  0x75   :  { %1797 = vmatpush3.bf16.msra.mxu0 %v1969_v26  ;;  %v2014_v24 = vld [vmem:[#allocation7 + $0x38] sm:$0xff]   ;;  %v2016_v26 = vld [vmem:[#allocation8 + $0x8] sm:$0xff]   ;;  %v1637_v34 = vld [vmem:[%s2327_s2] ss:$0 sm:$0xff] }
  0x76   :  { %1819 = vmatpush3.bf16.msra.mxu1 %v1970_v27  ;;  %1798 = vmatprep.subr.bf16.mxu0 %v1971_v28  ;;  %v2017_v27 = vld [vmem:[#allocation8 + $0x10] sm:$0xff]   ;;  %v2018_v28 = vld [vmem:[#allocation8 + $0x18] sm:$0xff]   ;;  %v1038_v8 = vld [vmem:[#allocation10 + $0x80] sm:$0xff] }
  0x77   :  { %1820 = vmatprep.subr.bf16.mxu1 %v1972_v29  ;;  %v2019_v29 = vld [vmem:[#allocation8 + $0x20] sm:$0xff]  }
  0x78   :  { %v1042_v9 = vld [vmem:[#allocation10 + $0xa0] sm:$0xff] }
  0x79   :  { %1799 = vmatpush3.bf16.msra.mxu0 %v1973_v30  ;;  %v2020_v30 = vld [vmem:[#allocation8 + $0x28] sm:$0xff]   ;;  %v1046_v12 = vld [vmem:[#allocation10 + $0xc0] sm:$0xff] }
  0x7a   :  { %1821 = vmatpush3.bf16.msra.mxu1 %v1974_v31  ;;  %1828 = vmatprep.subr.bf16.mxu0 %v1975_v40  ;;  %v2021_v31 = vld [vmem:[#allocation8 + $0x30] sm:$0xff]   ;;  %v1050_v13 = vld [vmem:[#allocation10 + $0xe0] sm:$0xff] }
  0x7b   :  { %1850 = vmatprep.subr.bf16.mxu1 %v1976_v41 }
  0x7c   :  { %668 = vmatmul.mubr.bf16.vlgmr.msra.gmra.mrb[0].mxu0 %v108_v37 }
  0x7d   :  { %708 = vmatmul.mubr.bf16.vlgmr.msra.gmra.mrb[0].mxu1 %v110_v39  ;;  %1829 = vmatpush3.bf16.msra.mxu0 %v1977_v42 }
  0x7e   :  { %1851 = vmatpush3.bf16.msra.mxu1 %v1978_v43  ;;  %1830 = vmatprep.subr.bf16.mxu0 %v1979_v44 }
  0x7f   :  { %1852 = vmatprep.subr.bf16.mxu1 %v1980_v45  ;;  %747 = vmatprep.mubr.bf16.mxu0 %v113_v10  ;;  %v1737_v10 = vcombine.high %v1038_v8, %v1042_v9 }
  0x80   :  { %787 = vmatprep.mubr.bf16.mxu1 %v115_v11  ;;  %v1736_v11 = vcombine.low %v1038_v8, %v1042_v9  ;;  %v1029_v8 = vld [vmem:[#allocation10 + $0x38] sm:$0xff]  ;;  %v2174_v9 = vmov 0  }
  0x81   :  { %1831 = vmatpush3.bf16.msra.mxu0 %v1981_v46 }
  0x82   :  { %1853 = vmatpush3.bf16.msra.mxu1 %v1982_v47  ;;  %1832 = vmatprep.subr.bf16.mxu0 %v1983_v48 }
  0x83   :  { %1854 = vmatprep.subr.bf16.mxu1 %v1984_v49 }
  0x85   :  { %1833 = vmatpush3.bf16.msra.mxu0 %v1985_v50 }
  0x86   :  { %1855 = vmatpush3.bf16.msra.mxu1 %v1986_v51  ;;  %1834 = vmatprep.subr.bf16.mxu0 %v1987_v52 }
  0x87   :  { %1856 = vmatprep.subr.bf16.mxu1 %v1988_v53 }
  0x89   :  { %1835 = vmatpush3.bf16.msra.mxu0 %v1989_v54 }
  0x8a   :  { %1857 = vmatpush3.bf16.msra.mxu1 %v1990_v55  ;;  %1836 = vmatprep.subr.bf16.mxu0 %v1991_v56 }
  0x8b   :  { %1858 = vmatprep.subr.bf16.mxu1 %v1992_v57 }
  0x8d   :  { %1837 = vmatpush3.bf16.msra.mxu0 %v1993_v58 }
  0x8e   :  { %1859 = vmatpush3.bf16.msra.mxu1 %v1994_v59  ;;  %1838 = vmatprep.subr.bf16.mxu0 %v1995_v60  ;;  %v2022_v59 = vld [vmem:[#allocation8 + $0x38] sm:$0xff]   ;;  %v1022_v60 = vld [vmem:[#allocation10] sm:$0xff] }
  0x8f   :  { %1860 = vmatprep.subr.bf16.mxu1 %v1996_v61  ;;  %v1026_v61 = vld [vmem:[#allocation10 + $0x20] sm:$0xff] }
  0x91   :  { %1839 = vmatpush3.bf16.msra.mxu0 %v1997_v62  ;;  %v1023_v62 = vld [vmem:[#allocation10 + $0x8] sm:$0xff] }
  0x92   :  { %1861 = vmatpush3.bf16.msra.mxu1 %v1998_v63  ;;  %1840 = vmatprep.subr.bf16.mxu0 %v1999_v0  ;;  %v1720_v63 = vcombine.low %v1022_v60, %v1026_v61  ;;  %v1721_v0 = vcombine.high %v1022_v60, %v1026_v61  ;;  %v1082_v60 = vld [vmem:[#allocation10 + $0x1e0] sm:$0xff]  ;;  %v1079_v61 = vld [vmem:[#allocation10 + $0x1c8] sm:$0xff] }
  0x93   :  { %1862 = vmatprep.subr.bf16.mxu1 %v2000_v1  ;;  %v1027_v1 = vld [vmem:[#allocation10 + $0x28] sm:$0xff] }
  0x95   :  { %1841 = vmatpush3.bf16.msra.mxu0 %v2001_v2  ;;  %v1030_v2 = vld [vmem:[#allocation10 + $0x40] sm:$0xff] }
  0x96   :  { %1863 = vmatpush3.bf16.msra.mxu1 %v2002_v3  ;;  %1842 = vmatprep.subr.bf16.mxu0 %v2003_v4  ;;  %v1034_v3 = vld [vmem:[#allocation10 + $0x60] sm:$0xff]  ;;  %v1722_v4 = vcombine.low %v1023_v62, %v1027_v1 }
  0x97   :  { %1864 = vmatprep.subr.bf16.mxu1 %v2004_v5  ;;  %v1723_v5 = vcombine.high %v1023_v62, %v1027_v1 }
  0x99   :  { %1843 = vmatpush3.bf16.msra.mxu0 %v2005_v6  ;;  %v1729_v6 = vcombine.high %v1030_v2, %v1034_v3 }
  0x9a   :  { %1865 = vmatpush3.bf16.msra.mxu1 %v2006_v7  ;;  %1890 = vmatprep.subr.bf16.mxu0 %v2172_v17  ;;  %v1728_v7 = vcombine.low %v1030_v2, %v1034_v3  ;;  %v1024_v3 = vld [vmem:[#allocation10 + $0x10] sm:$0xff] }
  0x9b   :  { %1910 = vmatprep.subr.bf16.mxu1 %v2172_v17 }
  0x9c   :  { %748 = vmatmul.mubr.bf16.vlgmr.msra.gmra.mrb[4].mxu0 %v112_v14  ;;  %v1745_v14 = vcombine.high %v1046_v12, %v1050_v13 }
  0x9d   :  { %788 = vmatmul.mubr.bf16.vlgmr.msra.gmra.mrb[4].mxu1 %v114_v15  ;;  %1891 = vmatpush3.bf16.msra.mxu0 %v2007_v16  ;;  %v1744_v15 = vcombine.low %v1046_v12, %v1050_v13  ;;  %v1054_v16 = vld [vmem:[#allocation10 + $0x100] sm:$0xff] }
  0x9e   :  { %1892 = vmatprep.subr.bf16.mxu0 %v2172_v17  ;;  %1906 = vmatprep.mubr.msk.bf16.mxu0 %vm2173_vm0, %v2172_v17  ;;  %v1711_v12 = vld [vmem:[%s2331_s6] ss:$0 sm:$0xff] }
  0x9f   :  { %1926 = vmatprep.mubr.msk.bf16.mxu1 %vm2173_vm0, %v2172_v17  ;;  %1911 = vmatpush3.bf16.msra.mxu1 %v2015_v25  ;;  %v1074_v25 = vld [vmem:[#allocation10 + $0x1a0] sm:$0xff] }
  0xa0   :  { %1912 = vmatprep.subr.bf16.mxu1 %v2172_v17 }
  0xa1   :  { %1893 = vmatpush3.bf16.msra.mxu0 %v2008_v18 }
  0xa2   :  { %1894 = vmatprep.subr.bf16.mxu0 %v2172_v17 }
  0xa3   :  { %1913 = vmatpush3.bf16.msra.mxu1 %v2016_v26 }
  0xa4   :  { %1914 = vmatprep.subr.bf16.mxu1 %v2172_v17 }
  0xa5   :  { %1895 = vmatpush3.bf16.msra.mxu0 %v2009_v19 }
  0xa6   :  { %1896 = vmatprep.subr.bf16.mxu0 %v2172_v17 }
  0xa7   :  { %1915 = vmatpush3.bf16.msra.mxu1 %v2017_v27 }
  0xa8   :  { %1916 = vmatprep.subr.bf16.mxu1 %v2172_v17 }
  0xa9   :  { %1897 = vmatpush3.bf16.msra.mxu0 %v2010_v20  ;;  %v1062_v20 = vld [vmem:[#allocation10 + $0x140] sm:$0xff] }
  0xaa   :  { %1898 = vmatprep.subr.bf16.mxu0 %v2172_v17 }
  0xab   :  { %1917 = vmatpush3.bf16.msra.mxu1 %v2018_v28  ;;  %v1702_v28 = vld [vmem:[%s2329_s4] ss:$0 sm:$0xff] }
  0xac   :  { %1918 = vmatprep.subr.bf16.mxu1 %v2172_v17 }
  0xad   :  { %1899 = vmatpush3.bf16.msra.mxu0 %v2011_v21  ;;  %v1066_v21 = vld [vmem:[#allocation10 + $0x160] sm:$0xff] }
  0xae   :  { %1900 = vmatprep.subr.bf16.mxu0 %v2172_v17 }
  0xaf   :  { %1919 = vmatpush3.bf16.msra.mxu1 %v2019_v29 }
  0xb0   :  { %1920 = vmatprep.subr.bf16.mxu1 %v2172_v17 }
  0xb1   :  { %1901 = vmatpush3.bf16.msra.mxu0 %v2012_v22  ;;  %v1761_v22 = vcombine.high %v1062_v20, %v1066_v21 }
  0xb2   :  { %1902 = vmatprep.subr.bf16.mxu0 %v2172_v17 }
  0xb3   :  { %1921 = vmatpush3.bf16.msra.mxu1 %v2020_v30  ;;  %v1031_v30 = vld [vmem:[#allocation10 + $0x48] sm:$0xff] }
  0xb4   :  { %1922 = vmatprep.subr.bf16.mxu1 %v2172_v17 }
  0xb5   :  { %1903 = vmatpush3.bf16.msra.mxu0 %v2013_v23  ;;  %v1760_v23 = vcombine.low %v1062_v20, %v1066_v21  ;;  %v1037_v20 = vld [vmem:[#allocation10 + $0x78] sm:$0xff] }
  0xb6   :  { %1904 = vmatprep.subr.bf16.mxu0 %v2172_v17 }
  0xb7   :  { %1923 = vmatpush3.bf16.msra.mxu1 %v2021_v31  ;;  %v1035_v31 = vld [vmem:[#allocation10 + $0x68] sm:$0xff] }
  0xb8   :  { %1924 = vmatprep.subr.bf16.mxu1 %v2172_v17  ;;  %v1058_v17 = vld [vmem:[#allocation10 + $0x120] sm:$0xff] }
  0xb9   :  { %1905 = vmatpush3.bf16.msra.mxu0 %v2014_v24  ;;  %v1753_v18 = vcombine.high %v1054_v16, %v1058_v17  ;;  %v1752_v19 = vcombine.low %v1054_v16, %v1058_v17  ;;  %v1070_v24 = vld [vmem:[#allocation10 + $0x180] sm:$0xff]  ;;  %v1032_v16 = vld [vmem:[#allocation10 + $0x50] sm:$0xff] }
  0xba   :  { %1448 = vmatprep.subr.bf16.mxu0 %v1721_v0  ;;  %v1769_v26 = vcombine.high %v1070_v24, %v1074_v25  ;;  %v1768_v27 = vcombine.low %v1070_v24, %v1074_v25 }
  0xbb   :  { %1925 = vmatpush3.bf16.msra.mxu1 %v2022_v59  ;;  %v1078_v59 = vld [vmem:[#allocation10 + $0x1c0] sm:$0xff] }
  0xbc   :  { %1489 = vmatprep.subr.bf16.mxu1 %v1723_v5  ;;  %v1777_v62 = vcombine.high %v1078_v59, %v1082_v60  ;;  %v1776_v0 = vcombine.low %v1078_v59, %v1082_v60  ;;  %v1025_v5 = vld [vmem:[#allocation10 + $0x18] sm:$0xff]  ;;  %v1076_v59 = vld [vmem:[#allocation10 + $0x1b0] sm:$0xff] }
  0xbd   :  { %v1073_v60 = vld [vmem:[#allocation10 + $0x198] sm:$0xff] }
 0x14f   :  { %v1800_v32 = vpop.f32.mrb[0].mxu0 }
 0x150   :  { %v1822_v33 = vpop.f32.mrb[0].mxu1  ;;  %v1801_v35 = vpop.f32.mrb[1].mxu0 }
 0x151   :  { %v1823_v36 = vpop.f32.mrb[1].mxu1  ;;  %v1802_v37 = vadd.f32 %v1801_v35, %v1800_v32  ;;  %v1803_v39 = vpop.f32.mrb[2].mxu0 }
 0x152   :  { %v1824_v38 = vadd.f32 %v1823_v36, %v1822_v33  ;;  %v1825_v40 = vpop.f32.mrb[2].mxu1  ;;  %v1804_v41 = vpop.f32.mrb[3].mxu0  ;;  %v1043_v39 = vld [vmem:[#allocation10 + $0xa8] sm:$0xff] }
 0x153   :  { %v1826_v42 = vpop.f32.mrb[3].mxu1  ;;  %v670_v43 = vadd.f32 %v1802_v37, %v1637_v34  ;;  %v1731_v37 = vcombine.high %v1031_v30, %v1035_v31  ;;  %v1730_v40 = vcombine.low %v1031_v30, %v1035_v31 }
 0x154   :  { %v1047_v42 = vld [vmem:[#allocation10 + $0xc8] sm:$0xff] }
 0x155   :  { %v710_v44 = vadd.f32 %v1824_v38, %v670_v43  ;;  %v1039_v38 = vld [vmem:[#allocation10 + $0x88] sm:$0xff] }
 0x156   :  { %v1739_v41 = vcombine.high %v1039_v38, %v1043_v39  ;;  %v1051_v43 = vld [vmem:[#allocation10 + $0xe8] sm:$0xff] }
 0x16f   :  { %v1844_v45 = vpop.f32.mrb[4].mxu0 }
 0x170   :  { %v1866_v46 = vpop.f32.mrb[4].mxu1  ;;  %v1845_v47 = vpop.f32.mrb[5].mxu0 }
 0x171   :  { %v1846_v48 = vadd.f32 %v1845_v47, %v1844_v45  ;;  %v1867_v49 = vpop.f32.mrb[5].mxu1  ;;  %v1847_v50 = vpop.f32.mrb[6].mxu0  ;;  %v1747_v45 = vcombine.high %v1047_v42, %v1051_v43  ;;  %v1059_v47 = vld [vmem:[#allocation10 + $0x128] sm:$0xff] }
 0x172   :  { %v1868_v51 = vadd.f32 %v1867_v49, %v1866_v46  ;;  %v1869_v52 = vpop.f32.mrb[6].mxu1  ;;  %v1848_v53 = vpop.f32.mrb[7].mxu0  ;;  %v1055_v46 = vld [vmem:[#allocation10 + $0x108] sm:$0xff] }
 0x173   :  { %v750_v54 = vadd.f32 %v1846_v48, %v710_v44  ;;  %v1870_v55 = vpop.f32.mrb[7].mxu1  ;;  %v1738_v44 = vcombine.low %v1039_v38, %v1043_v39  ;;  %v1746_v48 = vcombine.low %v1047_v42, %v1051_v43  ;;  %v1755_v49 = vcombine.high %v1055_v46, %v1059_v47  ;;  %v1063_v50 = vld [vmem:[#allocation10 + $0x148] sm:$0xff]  ;;  %v1056_v42 = vld [vmem:[#allocation10 + $0x110] sm:$0xff] }
 0x174   :  { %v1754_v52 = vcombine.low %v1055_v46, %v1059_v47  ;;  %v1075_v55 = vld [vmem:[#allocation10 + $0x1a8] sm:$0xff]  ;;  %v1060_v43 = vld [vmem:[#allocation10 + $0x130] sm:$0xff] }
 0x175   :  { %v790_v56 = vadd.f32 %v1868_v51, %v750_v54  ;;  %v1067_v51 = vld [vmem:[#allocation10 + $0x168] sm:$0xff] }
 0x176   :  { %v1763_v53 = vcombine.high %v1063_v50, %v1067_v51  ;;  %v1071_v54 = vld [vmem:[#allocation10 + $0x188] sm:$0xff] }
 0x177   :  { %v795_v57 = vmax.f32 %v790_v56, 0.0  ;;  %v1762_v56 = vcombine.low %v1063_v50, %v1067_v51  ;;  %v1064_v50 = vld [vmem:[#allocation10 + $0x150] sm:$0xff] }
 0x178   :  { %v1068_v51 = vld [vmem:[#allocation10 + $0x170] sm:$0xff] }
 0x179   :  { %v796_v58 = vpack.c.bf16 %v795_v57, %v795_v57  ;;  %v1771_v57 = vcombine.high %v1071_v54, %v1075_v55 }
 0x17b   :  { %1907 = vmatmul.mubr.bf16.vlgmr.msra.gmra.mrb[8].mxu0 %v796_v58  ;;  %v1770_v58 = vcombine.low %v1071_v54, %v1075_v55  ;;  %v1756_v54 = vcombine.low %v1056_v42, %v1060_v43 }
 0x17c   :  { %1449 = vmatpush1.bf16.msra.mxu0 %v1720_v63  ;;  %v1083_v63 = vld [vmem:[#allocation10 + $0x1e8] sm:$0xff]  ;;  %1480 = vmatprep.mubr.bf16.mxu0 %v2174_v9 }
 0x17d   :  { %1450 = vmatprep.subr.bf16.mxu0 %v1729_v6  ;;  %v1778_v1 = vcombine.low %v1079_v61, %v1083_v63  ;;  %v1779_v2 = vcombine.high %v1079_v61, %v1083_v63  ;;  %v1077_v61 = vld [vmem:[#allocation10 + $0x1b8] sm:$0xff] }
 0x180   :  { %1451 = vmatpush1.bf16.msra.mxu0 %v1728_v7 }
 0x181   :  { %1452 = vmatprep.subr.bf16.mxu0 %v1737_v10  ;;  %v1726_v10 = vcombine.low %v1025_v5, %v1029_v8 }
 0x184   :  { %1453 = vmatpush1.bf16.msra.mxu0 %v1736_v11  ;;  %v1727_v11 = vcombine.high %v1025_v5, %v1029_v8  ;;  %v1085_v5 = vld [vmem:[#allocation10 + $0x1f8] sm:$0xff] }
 0x185   :  { %1454 = vmatprep.subr.bf16.mxu0 %v1745_v14 }
 0x188   :  { %1455 = vmatpush1.bf16.msra.mxu0 %v1744_v15 }
 0x189   :  { %1456 = vmatprep.subr.bf16.mxu0 %v1753_v18  ;;  %v1036_v18 = vld [vmem:[#allocation10 + $0x70] sm:$0xff] }
 0x18a   :  { %v1733_v24 = vcombine.high %v1032_v16, %v1036_v18  ;;  %v1732_v30 = vcombine.low %v1032_v16, %v1036_v18  ;;  %v1086_v16 = vld [vmem:[%s2333_s8] sm:$0xff]  ;;  %s2175_s8 = smov [#allocation11]  }
 0x18b   :  { %s1626_s12 = sshll.u32 %s2175_s8, 4  ;;  %s1627_s12 = int_to_ptr.vmem [resolvable:$true] %s1626_s12 }
 0x18c   :  { %1457 = vmatpush1.bf16.msra.mxu0 %v1752_v19  ;;  %v1033_v19 = vld [vmem:[#allocation10 + $0x58] sm:$0xff]  ;;  %s2133_s13 = scalar_lea.vmem %s1627_s12, 1024  ;;  %p2138_p13 = scmp.lt.s32.totalorder %s1627_s12, %s1627_s12 }
 0x18d   :  { %1458 = vmatprep.subr.bf16.mxu0 %v1761_v22  ;;  %v1735_v25 = vcombine.high %v1033_v19, %v1037_v20  ;;  %v1734_v31 = vcombine.low %v1033_v19, %v1037_v20  ;;  %p2134_p12 = scmp.ne.s32.totalorder %s1627_s12, %s2133_s13  ;;  %p2139_p0 = scmp.lt.s32.totalorder %s2133_s13, %s2133_s13 }
 0x18f   :  { %p2140_p1 = por %p2139_p0, %p2138_p13 }
 0x190   :  { %1459 = vmatpush1.bf16.msra.mxu0 %v1760_v23 }
 0x191   :  { %1460 = vmatprep.subr.bf16.mxu0 %v1769_v26  ;;  %v1040_v26 = vld [vmem:[#allocation10 + $0x90] sm:$0xff]  ;;  %p2141_p2 = pnand %p2140_p1, %p2134_p12 }
 0x194   :  { %1461 = vmatpush1.bf16.msra.mxu0 %v1768_v27  ;;  %v1044_v27 = vld [vmem:[#allocation10 + $0xb0] sm:$0xff] }
 0x195   :  { %1462 = vmatprep.subr.bf16.mxu0 %v1777_v62  ;;  %v1740_v38 = vcombine.low %v1040_v26, %v1044_v27  ;;  %v1764_v62 = vcombine.low %v1064_v50, %v1068_v51 }
 0x198   :  { %1463 = vmatpush1.bf16.msra.mxu0 %v1776_v0 }
 0x24e   :  { %v902_v29 = vpop.f32.mrb[8].mxu0 }
 0x24f   :  { %v903_v32 = vadd.f32 %v1702_v28, %v902_v29  ;;  %v1908_v33 = vpop.f32.mrb[9].mxu0  ;;  %v1041_v28 = vld [vmem:[#allocation10 + $0x98] sm:$0xff] }
 0x250   :  { %v905_v34 = vpop.f32.mrb[10].mxu0  ;;  %v1045_v29 = vld [vmem:[#allocation10 + $0xb8] sm:$0xff] }
 0x251   :  { %v908_v35 = vpack.c.bf16 %v903_v32, %v903_v32  ;;  %v1909_v36 = vpop.f32.mrb[11].mxu0  ;;  %v1741_v32 = vcombine.high %v1040_v26, %v1044_v27  ;;  %v1743_v33 = vcombine.high %v1041_v28, %v1045_v29  ;;  %v1048_v34 = vld [vmem:[#allocation10 + $0xd0] sm:$0xff]  ;;  %v1742_v39 = vcombine.low %v1041_v28, %v1045_v29 }
 0x252   :  { %v1049_v36 = vld [vmem:[#allocation10 + $0xd8] sm:$0xff] }
 0x253   :  { %1927 = vmatmul.mubr.bf16.vlgmr.msra.gmra.mrb[8].mxu1 %v908_v35  ;;  %v1052_v35 = vld [vmem:[#allocation10 + $0xf0] sm:$0xff] }
 0x254   :  { %1490 = vmatpush1.bf16.msra.mxu1 %v1722_v4  ;;  %v1028_v4 = vld [vmem:[#allocation10 + $0x30] sm:$0xff]  ;;  %1521 = vmatprep.mubr.bf16.mxu1 %v2174_v9  ;;  %v1748_v46 = vcombine.low %v1048_v34, %v1052_v35 }
 0x255   :  { %1491 = vmatprep.subr.bf16.mxu1 %v1731_v37  ;;  %v1724_v6 = vcombine.low %v1024_v3, %v1028_v4  ;;  %v1725_v7 = vcombine.high %v1024_v3, %v1028_v4  ;;  %v1053_v37 = vld [vmem:[#allocation10 + $0xf8] sm:$0xff]  ;;  %v1084_v3 = vld [vmem:[#allocation10 + $0x1f0] sm:$0xff] }
 0x256   :  { %v1750_v47 = vcombine.low %v1049_v36, %v1053_v37  ;;  %v1081_v4 = vld [vmem:[#allocation10 + $0x1d8] sm:$0xff] }
 0x257   :  { %1530 = vmatprep.subr.bf16.mxu0 %v1725_v7  ;;  %v1774_v7 = vcombine.low %v1073_v60, %v1077_v61 }
 0x258   :  { %1492 = vmatpush1.bf16.msra.mxu1 %v1730_v40  ;;  %v1749_v40 = vcombine.high %v1048_v34, %v1052_v35 }
 0x259   :  { %1493 = vmatprep.subr.bf16.mxu1 %v1739_v41  ;;  %v1751_v41 = vcombine.high %v1049_v36, %v1053_v37 }
 0x25c   :  { %1494 = vmatpush1.bf16.msra.mxu1 %v1738_v44  ;;  %v1057_v44 = vld [vmem:[#allocation10 + $0x118] sm:$0xff] }
 0x25d   :  { %1495 = vmatprep.subr.bf16.mxu1 %v1747_v45  ;;  %v1061_v45 = vld [vmem:[#allocation10 + $0x138] sm:$0xff] }
 0x25e   :  { %v1758_v55 = vcombine.low %v1057_v44, %v1061_v45 }
 0x260   :  { %1496 = vmatpush1.bf16.msra.mxu1 %v1746_v48  ;;  %v1757_v48 = vcombine.high %v1056_v42, %v1060_v43 }
 0x261   :  { %1497 = vmatprep.subr.bf16.mxu1 %v1755_v49  ;;  %v1759_v49 = vcombine.high %v1057_v44, %v1061_v45 }
 0x264   :  { %1498 = vmatpush1.bf16.msra.mxu1 %v1754_v52  ;;  %v1065_v52 = vld [vmem:[#allocation10 + $0x158] sm:$0xff] }
 0x265   :  { %1499 = vmatprep.subr.bf16.mxu1 %v1763_v53  ;;  %v1069_v53 = vld [vmem:[#allocation10 + $0x178] sm:$0xff] }
 0x266   :  { %v1766_v63 = vcombine.low %v1065_v52, %v1069_v53 }
 0x268   :  { %1500 = vmatpush1.bf16.msra.mxu1 %v1762_v56  ;;  %v1765_v56 = vcombine.high %v1064_v50, %v1068_v51 }
 0x269   :  { %1501 = vmatprep.subr.bf16.mxu1 %v1771_v57  ;;  %v1767_v57 = vcombine.high %v1065_v52, %v1069_v53 }
 0x26c   :  { %1502 = vmatpush1.bf16.msra.mxu1 %v1770_v58  ;;  %v1072_v58 = vld [vmem:[#allocation10 + $0x190] sm:$0xff] }
 0x26d   :  { %1503 = vmatprep.subr.bf16.mxu1 %v1779_v2  ;;  %v1773_v0 = vcombine.high %v1072_v58, %v1076_v59  ;;  %v1080_v2 = vld [vmem:[#allocation10 + $0x1d0] sm:$0xff] }
 0x26e   :  { %v1781_v8 = vcombine.high %v1080_v2, %v1084_v3 }
 0x270   :  { %1504 = vmatpush1.bf16.msra.mxu1 %v1778_v1  ;;  %v1775_v1 = vcombine.high %v1073_v60, %v1077_v61 }
 0x271   :  { %1571 = vmatprep.subr.bf16.mxu1 %v1727_v11  ;;  %v1782_v11 = vcombine.low %v1081_v4, %v1085_v5 }
 0x326   :  { %v1014_v13 = vpop.f32.mrb[8].mxu1 }
 0x327   :  { %v1015_v14 = vadd.f32 %v1711_v12, %v1014_v13  ;;  %v1928_v15 = vpop.f32.mrb[9].mxu1  ;;  %v1088_v12 = vlaneseq }
 0x328   :  { %v1017_v17 = vpop.f32.mrb[10].mxu1 }
 0x329   :  { %v1020_v21 = vmax.f32 %v1015_v14, 0.0  ;;  %v1929_v22 = vpop.f32.mrb[11].mxu1  ;;  %v1089_v13 = vshrl.u32 %v1088_v12, 7 }
 0x32b   :  { %v2304_v23 = vpack.c.bf16 %v1020_v21, %v1020_v21  ;;  %v1090_v14 = vsub.s32 0, %v1089_v13  ;;  %v1098_v15 = vsub.s32 2, %v1089_v13  ;;  %v1094_v17 = vsub.s32 1, %v1089_v13 }
 0x32c   :  { %v1102_v18 = vsub.s32 3, %v1089_v13  ;;  %v1106_v35 = vsub.s32 4, %v1089_v13  ;;  %v1114_v36 = vsub.s32 6, %v1089_v13  ;;  %v1110_v37 = vsub.s32 5, %v1089_v13 }
 0x32d   :  { %1481 = vmatmul.mubr.bf16.vlgmr.msra.gmra.mrb[12].mxu0 %v2304_v23  ;;  %1522 = vmatmul.mubr.bf16.vlgmr.msra.gmra.mrb[12].mxu1 %v2304_v23  ;;  %v1091_v19 = vrot.slane %v1086_v16, %v1090_v14  ;;  %v1099_v20 = vrot.slane %v1086_v16, %v1098_v15  ;;  %v1095_v21 = vrot.slane %v1086_v16, %v1094_v17 }
 0x32e   :  { %1531 = vmatpush1.bf16.msra.mxu0 %v1724_v6  ;;  %1572 = vmatpush1.bf16.msra.mxu1 %v1726_v10  ;;  %v1772_v6 = vcombine.low %v1072_v58, %v1076_v59  ;;  %v1780_v10 = vcombine.low %v1080_v2, %v1084_v3  ;;  %v1103_v22 = vrot.slane %v1086_v16, %v1102_v18 }
 0x32f   :  { %1532 = vmatprep.subr.bf16.mxu0 %v1733_v24  ;;  %1573 = vmatprep.subr.bf16.mxu1 %v1735_v25 }
 0x330   :  { %1562 = vmatprep.mubr.bf16.mxu0 %v2174_v9  ;;  %1603 = vmatprep.mubr.bf16.mxu1 %v2174_v9  ;;  %v1783_v9 = vcombine.high %v1081_v4, %v1085_v5 }
 0x332   :  { %1533 = vmatpush1.bf16.msra.mxu0 %v1732_v30  ;;  %1574 = vmatpush1.bf16.msra.mxu1 %v1734_v31 }
 0x333   :  { %1534 = vmatprep.subr.bf16.mxu0 %v1741_v32  ;;  %1575 = vmatprep.subr.bf16.mxu1 %v1743_v33 }
 0x336   :  { %1535 = vmatpush1.bf16.msra.mxu0 %v1740_v38  ;;  %1576 = vmatpush1.bf16.msra.mxu1 %v1742_v39  ;;  %v1118_v38 = vsub.s32 7, %v1089_v13  ;;  %v1107_v39 = vrot.slane %v1086_v16, %v1106_v35 }
 0x337   :  { %1536 = vmatprep.subr.bf16.mxu0 %v1749_v40  ;;  %1577 = vmatprep.subr.bf16.mxu1 %v1751_v41  ;;  %v1115_v40 = vrot.slane %v1086_v16, %v1114_v36  ;;  %v1111_v41 = vrot.slane %v1086_v16, %v1110_v37 }
 0x338   :  { %v1119_v42 = vrot.slane %v1086_v16, %v1118_v38 }
 0x33a   :  { %1537 = vmatpush1.bf16.msra.mxu0 %v1748_v46  ;;  %1578 = vmatpush1.bf16.msra.mxu1 %v1750_v47 }
 0x33b   :  { %1538 = vmatprep.subr.bf16.mxu0 %v1757_v48  ;;  %1579 = vmatprep.subr.bf16.mxu1 %v1759_v49 }
 0x33e   :  { %1539 = vmatpush1.bf16.msra.mxu0 %v1756_v54  ;;  %1580 = vmatpush1.bf16.msra.mxu1 %v1758_v55 }
 0x33f   :  { %1540 = vmatprep.subr.bf16.mxu0 %v1765_v56  ;;  %1581 = vmatprep.subr.bf16.mxu1 %v1767_v57 }
 0x342   :  { %1541 = vmatpush1.bf16.msra.mxu0 %v1764_v62  ;;  %1582 = vmatpush1.bf16.msra.mxu1 %v1766_v63 }
 0x343   :  { %1542 = vmatprep.subr.bf16.mxu0 %v1773_v0  ;;  %1583 = vmatprep.subr.bf16.mxu1 %v1775_v1 }
 0x346   :  { %1543 = vmatpush1.bf16.msra.mxu0 %v1772_v6  ;;  %1584 = vmatpush1.bf16.msra.mxu1 %v1774_v7 }
 0x347   :  { %1544 = vmatprep.subr.bf16.mxu0 %v1781_v8  ;;  %1585 = vmatprep.subr.bf16.mxu1 %v1783_v9 }
 0x34a   :  { %1545 = vmatpush1.bf16.msra.mxu0 %v1780_v10  ;;  %1586 = vmatpush1.bf16.msra.mxu1 %v1782_v11 }
 0x34d   :  { %1563 = vmatmul.mubr.bf16.vlgmr.msra.gmra.mrb[16].mxu0 %v2304_v23  ;;  %1604 = vmatmul.mubr.bf16.vlgmr.msra.gmra.mrb[16].mxu1 %v2304_v23 }
 0x400   :  { %v1482_v24 = vpop.f32.mrb[12].mxu0  ;;  %v1523_v25 = vpop.f32.mrb[12].mxu1 }
 0x401   :  { %v1483_v26 = vadd.f32 %v1482_v24, %v1091_v19  ;;  %v1524_v27 = vadd.f32 %v1523_v25, %v1099_v20  ;;  %v1484_v28 = vpop.f32.mrb[13].mxu0  ;;  %v1525_v23 = vpop.f32.mrb[13].mxu1 }
 0x402   :  { %v1485_v29 = vadd.f32 %v1484_v28, %v1095_v21  ;;  %v1526_v30 = vadd.f32 %v1525_v23, %v1103_v22  ;;  %v1486_v31 = vpop.f32.mrb[14].mxu0  ;;  %v1527_v32 = vpop.f32.mrb[14].mxu1 }
 0x403   :  { %1612 = vst [vmem:[#allocation11] sm:$0xff] %v1483_v26  ;;  %1614 = vst [vmem:[#allocation11 + $0x10] sm:$0xff] %v1524_v27  ;;  %v1487_v33 = vpop.f32.mrb[15].mxu0  ;;  %v1528_v34 = vpop.f32.mrb[15].mxu1 }
 0x404   :  { %1613 = vst [vmem:[#allocation11 + $0x8] sm:$0xff] %v1485_v29  ;;  %1615 = vst [vmem:[#allocation11 + $0x18] sm:$0xff] %v1526_v30 }
 0x420   :  { %v1564_v43 = vpop.f32.mrb[16].mxu0  ;;  %v1605_v44 = vpop.f32.mrb[16].mxu1 }
 0x421   :  { %v1565_v45 = vadd.f32 %v1564_v43, %v1107_v39  ;;  %v1606_v46 = vadd.f32 %v1605_v44, %v1115_v40  ;;  %v1566_v47 = vpop.f32.mrb[17].mxu0  ;;  %v1607_v48 = vpop.f32.mrb[17].mxu1 }
 0x422   :  { %v1567_v49 = vadd.f32 %v1566_v47, %v1111_v41  ;;  %v1608_v50 = vadd.f32 %v1607_v48, %v1119_v42  ;;  %v1568_v51 = vpop.f32.mrb[18].mxu0  ;;  %v1609_v52 = vpop.f32.mrb[18].mxu1 }
 0x423   :  { %1616 = vst [vmem:[#allocation11 + $0x20] sm:$0xff] %v1565_v45  ;;  %1618 = vst [vmem:[#allocation11 + $0x30] sm:$0xff] %v1606_v46  ;;  %v1569_v53 = vpop.f32.mrb[19].mxu0  ;;  %v1610_v54 = vpop.f32.mrb[19].mxu1 }
 0x424   :  { %1617 = vst [vmem:[#allocation11 + $0x28] sm:$0xff] %v1567_v49  ;;  %1619 = vst [vmem:[#allocation11 + $0x38] sm:$0xff] %v1608_v50 }
 0x425   :  { %2144 = shalt.err (!%p2141_p2)
}
 0x426   :  { %s2145_s14 = scalar_lea.hbm %s2334_s9, 1024 }
 0x427   :  { %p2146_p3 = scmp.ne.s32.totalorder %s2334_s9, %s2145_s14  ;;  %p2149_p4 = scmp.lt.u32.totalorder %s2145_s14, %s2334_s9 }
 0x429   :  { %p2151_p5 = pnand %p2149_p4, %p2146_p3 }
 0x42b   :  { %2154 = shalt.err (!%p2151_p5)
}
 0x42c   :  { %1629 = dma.vmem_to_hbm [thread:$0]  %s1627_s12, 1024, %s2334_s9, [#allocation4]  }
 0x42d   :  { %2161 = dma.done.wait [#allocation4], 1024  }
 0x42e   :  { %2162 = vsyncadd [#allocation4], 4294966272 }
 0x42f   :  { %1633 = vsyncpa [#allocation3], 1 }
 0x430   :  { %1634 = vsyncpa [#allocation6], 1 }
 0x431   :  { %1635 = vsyncpa [#allocation9], 1 }
 0x432   :  { %1636 = vsyncpa [#allocation4], 1 }

</bundles_post_ra>
